<compile_context>
chip_gen: v5e
topology: v5e:2x2
jax: 0.10.0
libtpu: 0.0.40
codegen_flags: <defaults>
</compile_context>

<pallas_src>
from functools import partial

import jax
import jax.numpy as jnp
from jax.experimental import pallas as pl
from jax.experimental.pallas import tpu as pltpu

EPS = 1e-5

# Ordered per-layer parameter names (must match kernel signature order).
PARAM_KEYS = (
    "wqkv", "bqkv", "wo", "bo",     # self-attention (fused QKV proj + single output proj)
    "w1", "b1", "w2", "b2",         # conv1x1 FFN == per-token linear
    "g1", "be1", "g2", "be2",       # layer norms
)


# ----------------------------- in-kernel math ------------------------------


def _layernorm(x, gamma, beta):
    # x: (N, D), gamma/beta: (1, D)
    mu = jnp.mean(x, axis=-1, keepdims=True)
    var = jnp.mean((x - mu) ** 2, axis=-1, keepdims=True)
    return (x - mu) * jax.lax.rsqrt(var + EPS) * gamma + beta


def encoder_kernel(x_ref,
                   wqkv, bqkv, wo, bo,
                   w1, b1, w2, b2,
                   g1, be1, g2, be2,
                   gf_ref, bf_ref,
                   out_ref,
                   *, n_heads, batch, seq):
    """One grid step == one EncoderLayer on one batch tile.

    The activation is carried layer-to-layer in the output block itself: its block
    index is constant along the (inner) layer axis, so Pallas keeps it VMEM-resident
    and only writes it back to HBM when the batch-tile index changes.
    """
    layer = pl.program_id(1)
    n_layers = pl.num_programs(1)

    # Load the input activation once per batch tile (layer 0); afterwards it lives
    # in the resident output block.
    @pl.when(layer == 0)
    def _():
        out_ref[...] = x_ref[...]

    x = out_ref[...]                         # (N, D) f32, N = batch_tile * seq
    N, D = x.shape
    dh = D // n_heads

    xb = x.astype(jnp.bfloat16)              # bf16 inputs for MXU matmuls

    # ---- self-attention ----
    # Fused, lane-dense QKV projection: one (N, D) @ (D, 3D) matmul.
    # The 1/sqrt(dh) attention scale is pre-folded into the Q columns wrapper-side.
    qkv = jnp.dot(xb, wqkv[...], preferred_element_type=jnp.float32) + bqkv[...]

    head_outs = []
    # TODO(synk): for large n_heads / long sequences, replace this static per-head
    # loop with a fully head-batched (B, H, L, dh) einsum + flash-style KV tiling;
    # at these sizes the loop body is just the score/softmax/value product.
    for h in range(n_heads):
        off = h * dh
        q3 = qkv[:, off:off + dh].reshape(batch, seq, dh).astype(jnp.bfloat16)
        k3 = qkv[:, D + off:D + off + dh].reshape(batch, seq, dh).astype(jnp.bfloat16)
        v3 = qkv[:, 2 * D + off:2 * D + off + dh].reshape(batch, seq, dh).astype(jnp.bfloat16)

        s = jnp.einsum('bld,bmd->blm', q3, k3,
                       preferred_element_type=jnp.float32)            # (B, L, L) f32
        s = s - jnp.max(s, axis=-1, keepdims=True)
        p = jnp.exp(s)
        p = p * pl.reciprocal(jnp.sum(p, axis=-1, keepdims=True), approx=True)

        oh = jnp.einsum('blm,bmd->bld', p.astype(jnp.bfloat16), v3,
                        preferred_element_type=jnp.float32)           # (B, L, dh)
        head_outs.append(oh.reshape(N, dh))

    # Single lane-dense output projection on the head-concatenated output: (N,D)@(D,D).
    attn_cat = jnp.concatenate(head_outs, axis=-1).astype(jnp.bfloat16)
    attn_out = jnp.dot(attn_cat, wo[...], preferred_element_type=jnp.float32) + bo[...]

    # residual + norm1
    x = _layernorm(x + attn_out, g1[...], be1[...])

    # FFN: conv1(k=1) -> relu -> conv2(k=1)  ==  per-token MLP
    y = jnp.dot(x.astype(jnp.bfloat16), w1[...],
                preferred_element_type=jnp.float32) + b1[...]
    y = jnp.maximum(y, 0.0)
    y = jnp.dot(y.astype(jnp.bfloat16), w2[...],
                preferred_element_type=jnp.float32) + b2[...]

    # residual + norm2
    x = _layernorm(x + y, g2[...], be2[...])

    # Carry to the next layer, or apply the Encoder's final LayerNorm exactly once.
    @pl.when(layer < n_layers - 1)
    def _():
        out_ref[...] = x

    @pl.when(layer == n_layers - 1)
    def _():
        out_ref[...] = _layernorm(x, gf_ref[...], bf_ref[...])


# ------------------------------ host wrappers -------------------------------


def _layer_spec(shape):
    """Weight stacked as (n_layers, ...): stream one layer per grid step,
    squeezing the leading size-1 block dim."""
    nd = len(shape)
    return pl.BlockSpec((None,) + tuple(shape[1:]),
                        lambda b, l, _nd=nd: (l,) + (0,) * (_nd - 1))


def encoder_forward(x, enc_params, n_heads, *, batch_tile=None,
                    vmem_limit_bytes=48 * 1024 * 1024):
    """Informer `Encoder`: fused stack of EncoderLayers + final LayerNorm."""
    B, L, D = x.shape
    N = B * L

    bt = batch_tile or B
    # Keep the (8, 128) BlockSpec constraint satisfied; fall back to a single tile.
    if B % bt != 0 or (bt != B and (bt * L) % 8 != 0):
        bt = B
    n_btiles = B // bt
    tile_rows = bt * L

    xf = x.reshape(N, D)                                   # fold batch into matmul M dim

    stacked = enc_params["layers"]
    n_layers = enc_params["n_layers"]
    weights = [stacked[k] for k in PARAM_KEYS]

    in_specs = (
        [pl.BlockSpec((tile_rows, D), lambda b, l: (b, 0))]     # x: one block per batch tile
        + [_layer_spec(w.shape) for w in weights]               # per-layer weights, prefetched
        + [pl.BlockSpec((1, D), lambda b, l: (0, 0)),           # final norm gamma
           pl.BlockSpec((1, D), lambda b, l: (0, 0))]           # final norm beta
    )

    out = pl.pallas_call(
        partial(encoder_kernel, n_heads=n_heads, batch=bt, seq=L),
        out_shape=jax.ShapeDtypeStruct((N, D), jnp.float32),
        grid_spec=pltpu.PrefetchScalarGridSpec(
            num_scalar_prefetch=0,
            grid=(n_btiles, n_layers),                          # layers sequential (inner)
            in_specs=in_specs,
            out_specs=pl.BlockSpec((tile_rows, D), lambda b, l: (b, 0)),
        ),
        compiler_params=pltpu.CompilerParams(
            dimension_semantics=("parallel", "arbitrary"),      # batch tiles shard on v7x
            vmem_limit_bytes=vmem_limit_bytes,                  # safe for v5e..v7x defaults
        ),
    )(xf, *weights, enc_params["gf"], enc_params["bf"])

    return out.reshape(B, L, D)


def encoder_stack_forward(x, encoder_params, inp_lens, n_heads, batch_tile=None):
    """EncoderStack.forward: each encoder consumes the last L // 2**i_len tokens;
    outputs are concatenated along the sequence axis. Returns (x_stack, attns)."""
    _, L, _ = x.shape
    x_stack, attns = [], []
    for i_len, enc_p in zip(inp_lens, encoder_params):
        inp_len = L // (2 ** i_len)
        x_s = encoder_forward(x[:, -inp_len:, :], enc_p, n_heads, batch_tile=batch_tile)
        x_stack.append(x_s)
        # FullAttention(output_attention=False) returns None per layer (eval default).
        attns.append([None] * enc_p["n_layers"])
    return jnp.concatenate(x_stack, axis=-2), attns


# ------------------------------ parameter init ------------------------------


def init_encoder_params(key, n_layers, d_model, d_ff, n_heads):
    """Random params in kernel layout.

    Torch correspondence: linear weights are stored pre-transposed so y = x @ W + b
    equals torch's x @ W.T + b; the Q/K/V projections are fused column-wise into a
    single (D, 3D) matrix (head h of Q/K/V == columns [h*dh, (h+1)*dh) of each D-wide
    block, matching torch's contiguous per-head split), the 1/sqrt(dh) attention scale
    is folded into the Q columns of Wqkv AND bqkv, and matmul weights are cast to bf16
    (f32 accumulation in-kernel). Conv1d(kernel_size=1) FFN == per-token linear.
    """
    D, F, H = d_model, d_ff, n_heads
    dh = D // H
    qscale = 1.0 / (dh ** 0.5)

    layer_keys = jax.random.split(key, n_layers)

    def w(k, shape, s=0.1):
        return jax.random.normal(k, shape, jnp.float32) * s

    per_layer = []
    for lk in layer_keys:
        ks = jax.random.split(lk, 6)
        p = {}
        wq = w(ks[0], (D, D)) * qscale                     # fold 1/sqrt(dh) into Wq
        wk = w(ks[1], (D, D))
        wv = w(ks[2], (D, D))
        p["wqkv"] = jnp.concatenate([wq, wk, wv], axis=1).astype(jnp.bfloat16)   # (D, 3D)
        bq = jnp.zeros((D,), jnp.float32) * qscale         # scale applied (no-op on zeros)
        bk = jnp.zeros((D,), jnp.float32)
        bv = jnp.zeros((D,), jnp.float32)
        p["bqkv"] = jnp.concatenate([bq, bk, bv]).reshape(1, 3 * D)
        p["wo"] = w(ks[3], (D, D)).astype(jnp.bfloat16)
        p["bo"] = jnp.zeros((1, D), jnp.float32)
        # FFN (conv1x1)
        p["w1"] = w(ks[4], (D, F)).astype(jnp.bfloat16)
        p["b1"] = jnp.zeros((1, F), jnp.float32)
        p["w2"] = w(ks[5], (F, D)).astype(jnp.bfloat16)
        p["b2"] = jnp.zeros((1, D), jnp.float32)
        # layer norms
        p["g1"] = jnp.ones((1, D), jnp.float32)
        p["be1"] = jnp.zeros((1, D), jnp.float32)
        p["g2"] = jnp.ones((1, D), jnp.float32)
        p["be2"] = jnp.zeros((1, D), jnp.float32)
        per_layer.append(p)

    layers = {k: jnp.stack([p[k] for p in per_layer]) for k in PARAM_KEYS}
    return {
        "layers": layers,
        "gf": jnp.ones((1, D), jnp.float32),    # Encoder final LayerNorm
        "bf": jnp.zeros((1, D), jnp.float32),
        "n_layers": n_layers,
    }


# ---------------------------------- main ------------------------------------

if __name__ == "__main__":
    B, L, D_MODEL, N_HEADS, D_FF = 2, 16, 32, 4, 64
    INP_LENS = [0, 1]       # encoder 0 sees all 16 tokens, encoder 1 sees the last 8
    E_LAYERS = [2, 1]       # Informer-style shrinking per-encoder layer counts

    root = jax.random.PRNGKey(0)
    kx, *enc_keys = jax.random.split(root, 1 + len(INP_LENS))

    x = jax.random.normal(kx, (B, L, D_MODEL), jnp.float32)
    encoder_params = [init_encoder_params(k, nl, D_MODEL, D_FF, N_HEADS)
                      for k, nl in zip(enc_keys, E_LAYERS)]

    # batch_tile=1 exercises the (parallel batch-tile, sequential layer) 2-D grid.
    out, attns = encoder_stack_forward(x, encoder_params, INP_LENS, N_HEADS, batch_tile=1)
    out = jax.block_until_ready(out)

    expected_len = sum(L // (2 ** i) for i in INP_LENS)   # 16 + 8 = 24
    assert out.shape == (B, expected_len, D_MODEL), out.shape
    assert jnp.isfinite(out).all()
    assert len(attns) == len(INP_LENS)
    print("KERNEL_OK")
</pallas_src>

<mosaic_0001>
module attributes {stable_mosaic.version = 11 : i64} {
  func.func @encoder_kernel(%arg0: i32, %arg1: i32, %arg2: memref<16x32xf32, #tpu.memory_space<vmem>>, %arg3: memref<1x32x96xbf16, #tpu.memory_space<vmem>>, %arg4: memref<1x1x96xf32, #tpu.memory_space<vmem>>, %arg5: memref<1x32x32xbf16, #tpu.memory_space<vmem>>, %arg6: memref<1x1x32xf32, #tpu.memory_space<vmem>>, %arg7: memref<1x32x64xbf16, #tpu.memory_space<vmem>>, %arg8: memref<1x1x64xf32, #tpu.memory_space<vmem>>, %arg9: memref<1x64x32xbf16, #tpu.memory_space<vmem>>, %arg10: memref<1x1x32xf32, #tpu.memory_space<vmem>>, %arg11: memref<1x1x32xf32, #tpu.memory_space<vmem>>, %arg12: memref<1x1x32xf32, #tpu.memory_space<vmem>>, %arg13: memref<1x1x32xf32, #tpu.memory_space<vmem>>, %arg14: memref<1x1x32xf32, #tpu.memory_space<vmem>>, %arg15: memref<1x32xf32, #tpu.memory_space<vmem>>, %arg16: memref<1x32xf32, #tpu.memory_space<vmem>>, %arg17: memref<16x32xf32, #tpu.memory_space<vmem>>) attributes {dimension_semantics = [#tpu.dimension_semantics<parallel>, #tpu.dimension_semantics<arbitrary>], iteration_bounds = array<i64: 2, 2>, scalar_prefetch = 0 : i64, scratch_operands = 0 : i64, tpu.core_type = #tpu.core_type<tc>, window_params = [{transform_indices = @transform_0, window_bounds = array<i64: 16, 32>}, {transform_indices = @transform_1, window_bounds = array<i64: 1, 32, 96>}, {transform_indices = @transform_2, window_bounds = array<i64: 1, 1, 96>}, {transform_indices = @transform_3, window_bounds = array<i64: 1, 32, 32>}, {transform_indices = @transform_4, window_bounds = array<i64: 1, 1, 32>}, {transform_indices = @transform_5, window_bounds = array<i64: 1, 32, 64>}, {transform_indices = @transform_6, window_bounds = array<i64: 1, 1, 64>}, {transform_indices = @transform_7, window_bounds = array<i64: 1, 64, 32>}, {transform_indices = @transform_8, window_bounds = array<i64: 1, 1, 32>}, {transform_indices = @transform_9, window_bounds = array<i64: 1, 1, 32>}, {transform_indices = @transform_10, window_bounds = array<i64: 1, 1, 32>}, {transform_indices = @transform_11, window_bounds = array<i64: 1, 1, 32>}, {transform_indices = @transform_12, window_bounds = array<i64: 1, 1, 32>}, {pipeline_mode = #tpu.pipeline_mode<synchronous>, transform_indices = @transform_13, window_bounds = array<i64: 1, 32>}, {pipeline_mode = #tpu.pipeline_mode<synchronous>, transform_indices = @transform_14, window_bounds = array<i64: 1, 32>}, {transform_indices = @transform_15, window_bounds = array<i64: 16, 32>}]} {
    %c0_i32 = arith.constant 0 : i32
    %0 = arith.cmpi eq, %arg1, %c0_i32 : i32
    %1 = arith.extui %0 : i1 to i32
    %c0_i32_0 = arith.constant 0 : i32
    %2 = arith.cmpi ne, %1, %c0_i32_0 : i32
    scf.if %2 {
      %c0_71 = arith.constant 0 : index
      %c0_72 = arith.constant 0 : index
      %191 = vector.load %arg2[%c0_71, %c0_72] : memref<16x32xf32, #tpu.memory_space<vmem>>, vector<16x32xf32>
      %c0_73 = arith.constant 0 : index
      %c0_74 = arith.constant 0 : index
      %192 = vector.load %arg17[%c0_73, %c0_74] : memref<16x32xf32, #tpu.memory_space<vmem>>, vector<16x32xf32>
      tpu.vector_store %arg17[%c0_73, %c0_74], %191 {strides = array<i32>} : memref<16x32xf32, #tpu.memory_space<vmem>>, vector<16x32xf32>,
    } else {
    }
    %c0 = arith.constant 0 : index
    %c0_1 = arith.constant 0 : index
    %3 = vector.load %arg17[%c0, %c0_1] : memref<16x32xf32, #tpu.memory_space<vmem>>, vector<16x32xf32>
    %4 = arith.truncf %3 : vector<16x32xf32> to vector<16x32xbf16>
    %c0_2 = arith.constant 0 : index
    %c0_3 = arith.constant 0 : index
    %c0_4 = arith.constant 0 : index
    %5 = vector.load %arg3[%c0_2, %c0_3, %c0_4] : memref<1x32x96xbf16, #tpu.memory_space<vmem>>, vector<1x32x96xbf16>
    %6 = vector.shape_cast %5 : vector<1x32x96xbf16> to vector<32x96xbf16>
    %cst = arith.constant dense<0.000000e+00> : vector<16x96xf32>
    %7 = tpu.matmul %4, %6, %cst {dimension_numbers = #tpu.dot_dimension_numbers<[1], [0], [0], [1], [0, 0, 1, 1], [], []>} : vector<16x32xbf16>, vector<32x96xbf16>, vector<16x96xf32> -> vector<16x96xf32>
    %c0_5 = arith.constant 0 : index
    %c0_6 = arith.constant 0 : index
    %c0_7 = arith.constant 0 : index
    %8 = vector.load %arg4[%c0_5, %c0_6, %c0_7] : memref<1x1x96xf32, #tpu.memory_space<vmem>>, vector<1x1x96xf32>
    %9 = vector.shape_cast %8 : vector<1x1x96xf32> to vector<1x96xf32>
    %10 = vector.broadcast %9 : vector<1x96xf32> to vector<16x96xf32>
    %11 = arith.addf %7, %10 : vector<16x96xf32>
    %12 = vector.extract_strided_slice %11 {offsets = [0, 0], sizes = [16, 8], strides = [1, 1]} : vector<16x96xf32> to vector<16x8xf32>
    %13 = vector.shape_cast %12 : vector<16x8xf32> to vector<1x16x8xf32>
    %14 = arith.truncf %13 : vector<1x16x8xf32> to vector<1x16x8xbf16>
    %15 = vector.extract_strided_slice %11 {offsets = [0, 32], sizes = [16, 8], strides = [1, 1]} : vector<16x96xf32> to vector<16x8xf32>
    %16 = vector.shape_cast %15 : vector<16x8xf32> to vector<1x16x8xf32>
    %17 = arith.truncf %16 : vector<1x16x8xf32> to vector<1x16x8xbf16>
    %18 = vector.extract_strided_slice %11 {offsets = [0, 64], sizes = [16, 8], strides = [1, 1]} : vector<16x96xf32> to vector<16x8xf32>
    %19 = vector.shape_cast %18 : vector<16x8xf32> to vector<1x16x8xf32>
    %20 = arith.truncf %19 : vector<1x16x8xf32> to vector<1x16x8xbf16>
    "tpu.trace_start"() <{level = 10 : i32, message = "bld,bmd->blm"}> : () -> ()
    %cst_8 = arith.constant dense<0.000000e+00> : vector<1x16x16xf32>
    %21 = tpu.matmul %14, %17, %cst_8 {dimension_numbers = #tpu.dot_dimension_numbers<[2], [2], [1], [1], [0, 0, 0, 1, 1, 1], [0], [0]>} : vector<1x16x8xbf16>, vector<1x16x8xbf16>, vector<1x16x16xf32> -> vector<1x16x16xf32>
    "tpu.trace_stop"() : () -> ()
    %cst_9 = arith.constant dense<0xFF800000> : vector<1x16xf32>
    %22 = vector.multi_reduction <maximumf>, %21, %cst_9 [2] : vector<1x16x16xf32> to vector<1x16xf32>
    %23 = vector.shape_cast %22 : vector<1x16xf32> to vector<1x16x1xf32>
    %24 = vector.broadcast %23 : vector<1x16x1xf32> to vector<1x16x16xf32>
    %25 = arith.subf %21, %24 : vector<1x16x16xf32>
    %26 = math.exp %25 : vector<1x16x16xf32>
    %cst_10 = arith.constant dense<0.000000e+00> : vector<1x16xf32>
    %27 = vector.multi_reduction <add>, %26, %cst_10 [2] : vector<1x16x16xf32> to vector<1x16xf32>
    %28 = vector.shape_cast %27 : vector<1x16xf32> to vector<1x16x1xf32>
    %29 = tpu.reciprocal %28 {approx = true} : vector<1x16x1xf32> -> vector<1x16x1xf32>
    %30 = vector.broadcast %29 : vector<1x16x1xf32> to vector<1x16x16xf32>
    %31 = arith.mulf %26, %30 : vector<1x16x16xf32>
    %32 = arith.truncf %31 : vector<1x16x16xf32> to vector<1x16x16xbf16>
    "tpu.trace_start"() <{level = 10 : i32, message = "blm,bmd->bld"}> : () -> ()
    %cst_11 = arith.constant dense<0.000000e+00> : vector<1x16x8xf32>
    %33 = tpu.matmul %32, %20, %cst_11 {dimension_numbers = #tpu.dot_dimension_numbers<[2], [1], [1], [2], [0, 0, 0, 1, 1, 2], [0], [0]>} : vector<1x16x16xbf16>, vector<1x16x8xbf16>, vector<1x16x8xf32> -> vector<1x16x8xf32>
    "tpu.trace_stop"() : () -> ()
    %34 = vector.shape_cast %33 : vector<1x16x8xf32> to vector<16x8xf32>
    %35 = vector.extract_strided_slice %11 {offsets = [0, 8], sizes = [16, 8], strides = [1, 1]} : vector<16x96xf32> to vector<16x8xf32>
    %36 = vector.shape_cast %35 : vector<16x8xf32> to vector<1x16x8xf32>
    %37 = arith.truncf %36 : vector<1x16x8xf32> to vector<1x16x8xbf16>
    %38 = vector.extract_strided_slice %11 {offsets = [0, 40], sizes = [16, 8], strides = [1, 1]} : vector<16x96xf32> to vector<16x8xf32>
    %39 = vector.shape_cast %38 : vector<16x8xf32> to vector<1x16x8xf32>
    %40 = arith.truncf %39 : vector<1x16x8xf32> to vector<1x16x8xbf16>
    %41 = vector.extract_strided_slice %11 {offsets = [0, 72], sizes = [16, 8], strides = [1, 1]} : vector<16x96xf32> to vector<16x8xf32>
    %42 = vector.shape_cast %41 : vector<16x8xf32> to vector<1x16x8xf32>
    %43 = arith.truncf %42 : vector<1x16x8xf32> to vector<1x16x8xbf16>
    "tpu.trace_start"() <{level = 10 : i32, message = "bld,bmd->blm"}> : () -> ()
    %cst_12 = arith.constant dense<0.000000e+00> : vector<1x16x16xf32>
    %44 = tpu.matmul %37, %40, %cst_12 {dimension_numbers = #tpu.dot_dimension_numbers<[2], [2], [1], [1], [0, 0, 0, 1, 1, 1], [0], [0]>} : vector<1x16x8xbf16>, vector<1x16x8xbf16>, vector<1x16x16xf32> -> vector<1x16x16xf32>
    "tpu.trace_stop"() : () -> ()
    %cst_13 = arith.constant dense<0xFF800000> : vector<1x16xf32>
    %45 = vector.multi_reduction <maximumf>, %44, %cst_13 [2] : vector<1x16x16xf32> to vector<1x16xf32>
    %46 = vector.shape_cast %45 : vector<1x16xf32> to vector<1x16x1xf32>
    %47 = vector.broadcast %46 : vector<1x16x1xf32> to vector<1x16x16xf32>
    %48 = arith.subf %44, %47 : vector<1x16x16xf32>
    %49 = math.exp %48 : vector<1x16x16xf32>
    %cst_14 = arith.constant dense<0.000000e+00> : vector<1x16xf32>
    %50 = vector.multi_reduction <add>, %49, %cst_14 [2] : vector<1x16x16xf32> to vector<1x16xf32>
    %51 = vector.shape_cast %50 : vector<1x16xf32> to vector<1x16x1xf32>
    %52 = tpu.reciprocal %51 {approx = true} : vector<1x16x1xf32> -> vector<1x16x1xf32>
    %53 = vector.broadcast %52 : vector<1x16x1xf32> to vector<1x16x16xf32>
    %54 = arith.mulf %49, %53 : vector<1x16x16xf32>
    %55 = arith.truncf %54 : vector<1x16x16xf32> to vector<1x16x16xbf16>
    "tpu.trace_start"() <{level = 10 : i32, message = "blm,bmd->bld"}> : () -> ()
    %cst_15 = arith.constant dense<0.000000e+00> : vector<1x16x8xf32>
    %56 = tpu.matmul %55, %43, %cst_15 {dimension_numbers = #tpu.dot_dimension_numbers<[2], [1], [1], [2], [0, 0, 0, 1, 1, 2], [0], [0]>} : vector<1x16x16xbf16>, vector<1x16x8xbf16>, vector<1x16x8xf32> -> vector<1x16x8xf32>
    "tpu.trace_stop"() : () -> ()
    %57 = vector.shape_cast %56 : vector<1x16x8xf32> to vector<16x8xf32>
    %58 = vector.extract_strided_slice %11 {offsets = [0, 16], sizes = [16, 8], strides = [1, 1]} : vector<16x96xf32> to vector<16x8xf32>
    %59 = vector.shape_cast %58 : vector<16x8xf32> to vector<1x16x8xf32>
    %60 = arith.truncf %59 : vector<1x16x8xf32> to vector<1x16x8xbf16>
    %61 = vector.extract_strided_slice %11 {offsets = [0, 48], sizes = [16, 8], strides = [1, 1]} : vector<16x96xf32> to vector<16x8xf32>
    %62 = vector.shape_cast %61 : vector<16x8xf32> to vector<1x16x8xf32>
    %63 = arith.truncf %62 : vector<1x16x8xf32> to vector<1x16x8xbf16>
    %64 = vector.extract_strided_slice %11 {offsets = [0, 80], sizes = [16, 8], strides = [1, 1]} : vector<16x96xf32> to vector<16x8xf32>
    %65 = vector.shape_cast %64 : vector<16x8xf32> to vector<1x16x8xf32>
    %66 = arith.truncf %65 : vector<1x16x8xf32> to vector<1x16x8xbf16>
    "tpu.trace_start"() <{level = 10 : i32, message = "bld,bmd->blm"}> : () -> ()
    %cst_16 = arith.constant dense<0.000000e+00> : vector<1x16x16xf32>
    %67 = tpu.matmul %60, %63, %cst_16 {dimension_numbers = #tpu.dot_dimension_numbers<[2], [2], [1], [1], [0, 0, 0, 1, 1, 1], [0], [0]>} : vector<1x16x8xbf16>, vector<1x16x8xbf16>, vector<1x16x16xf32> -> vector<1x16x16xf32>
    "tpu.trace_stop"() : () -> ()
    %cst_17 = arith.constant dense<0xFF800000> : vector<1x16xf32>
    %68 = vector.multi_reduction <maximumf>, %67, %cst_17 [2] : vector<1x16x16xf32> to vector<1x16xf32>
    %69 = vector.shape_cast %68 : vector<1x16xf32> to vector<1x16x1xf32>
    %70 = vector.broadcast %69 : vector<1x16x1xf32> to vector<1x16x16xf32>
    %71 = arith.subf %67, %70 : vector<1x16x16xf32>
    %72 = math.exp %71 : vector<1x16x16xf32>
    %cst_18 = arith.constant dense<0.000000e+00> : vector<1x16xf32>
    %73 = vector.multi_reduction <add>, %72, %cst_18 [2] : vector<1x16x16xf32> to vector<1x16xf32>
    %74 = vector.shape_cast %73 : vector<1x16xf32> to vector<1x16x1xf32>
    %75 = tpu.reciprocal %74 {approx = true} : vector<1x16x1xf32> -> vector<1x16x1xf32>
    %76 = vector.broadcast %75 : vector<1x16x1xf32> to vector<1x16x16xf32>
    %77 = arith.mulf %72, %76 : vector<1x16x16xf32>
    %78 = arith.truncf %77 : vector<1x16x16xf32> to vector<1x16x16xbf16>
    "tpu.trace_start"() <{level = 10 : i32, message = "blm,bmd->bld"}> : () -> ()
    %cst_19 = arith.constant dense<0.000000e+00> : vector<1x16x8xf32>
    %79 = tpu.matmul %78, %66, %cst_19 {dimension_numbers = #tpu.dot_dimension_numbers<[2], [1], [1], [2], [0, 0, 0, 1, 1, 2], [0], [0]>} : vector<1x16x16xbf16>, vector<1x16x8xbf16>, vector<1x16x8xf32> -> vector<1x16x8xf32>
    "tpu.trace_stop"() : () -> ()
    %80 = vector.shape_cast %79 : vector<1x16x8xf32> to vector<16x8xf32>
    %81 = vector.extract_strided_slice %11 {offsets = [0, 24], sizes = [16, 8], strides = [1, 1]} : vector<16x96xf32> to vector<16x8xf32>
    %82 = vector.shape_cast %81 : vector<16x8xf32> to vector<1x16x8xf32>
    %83 = arith.truncf %82 : vector<1x16x8xf32> to vector<1x16x8xbf16>
    %84 = vector.extract_strided_slice %11 {offsets = [0, 56], sizes = [16, 8], strides = [1, 1]} : vector<16x96xf32> to vector<16x8xf32>
    %85 = vector.shape_cast %84 : vector<16x8xf32> to vector<1x16x8xf32>
    %86 = arith.truncf %85 : vector<1x16x8xf32> to vector<1x16x8xbf16>
    %87 = vector.extract_strided_slice %11 {offsets = [0, 88], sizes = [16, 8], strides = [1, 1]} : vector<16x96xf32> to vector<16x8xf32>
    %88 = vector.shape_cast %87 : vector<16x8xf32> to vector<1x16x8xf32>
    %89 = arith.truncf %88 : vector<1x16x8xf32> to vector<1x16x8xbf16>
    "tpu.trace_start"() <{level = 10 : i32, message = "bld,bmd->blm"}> : () -> ()
    %cst_20 = arith.constant dense<0.000000e+00> : vector<1x16x16xf32>
    %90 = tpu.matmul %83, %86, %cst_20 {dimension_numbers = #tpu.dot_dimension_numbers<[2], [2], [1], [1], [0, 0, 0, 1, 1, 1], [0], [0]>} : vector<1x16x8xbf16>, vector<1x16x8xbf16>, vector<1x16x16xf32> -> vector<1x16x16xf32>
    "tpu.trace_stop"() : () -> ()
    %cst_21 = arith.constant dense<0xFF800000> : vector<1x16xf32>
    %91 = vector.multi_reduction <maximumf>, %90, %cst_21 [2] : vector<1x16x16xf32> to vector<1x16xf32>
    %92 = vector.shape_cast %91 : vector<1x16xf32> to vector<1x16x1xf32>
    %93 = vector.broadcast %92 : vector<1x16x1xf32> to vector<1x16x16xf32>
    %94 = arith.subf %90, %93 : vector<1x16x16xf32>
    %95 = math.exp %94 : vector<1x16x16xf32>
    %cst_22 = arith.constant dense<0.000000e+00> : vector<1x16xf32>
    %96 = vector.multi_reduction <add>, %95, %cst_22 [2] : vector<1x16x16xf32> to vector<1x16xf32>
    %97 = vector.shape_cast %96 : vector<1x16xf32> to vector<1x16x1xf32>
    %98 = tpu.reciprocal %97 {approx = true} : vector<1x16x1xf32> -> vector<1x16x1xf32>
    %99 = vector.broadcast %98 : vector<1x16x1xf32> to vector<1x16x16xf32>
    %100 = arith.mulf %95, %99 : vector<1x16x16xf32>
    %101 = arith.truncf %100 : vector<1x16x16xf32> to vector<1x16x16xbf16>
    "tpu.trace_start"() <{level = 10 : i32, message = "blm,bmd->bld"}> : () -> ()
    %cst_23 = arith.constant dense<0.000000e+00> : vector<1x16x8xf32>
    %102 = tpu.matmul %101, %89, %cst_23 {dimension_numbers = #tpu.dot_dimension_numbers<[2], [1], [1], [2], [0, 0, 0, 1, 1, 2], [0], [0]>} : vector<1x16x16xbf16>, vector<1x16x8xbf16>, vector<1x16x8xf32> -> vector<1x16x8xf32>
    "tpu.trace_stop"() : () -> ()
    %103 = vector.shape_cast %102 : vector<1x16x8xf32> to vector<16x8xf32>
    %104 = tpu.concatenate %34, %57, %80, %103 in 1 : vector<16x8xf32>, vector<16x8xf32>, vector<16x8xf32>, vector<16x8xf32> -> vector<16x32xf32>
    %105 = arith.truncf %104 : vector<16x32xf32> to vector<16x32xbf16>
    %c0_24 = arith.constant 0 : index
    %c0_25 = arith.constant 0 : index
    %c0_26 = arith.constant 0 : index
    %106 = vector.load %arg5[%c0_24, %c0_25, %c0_26] : memref<1x32x32xbf16, #tpu.memory_space<vmem>>, vector<1x32x32xbf16>
    %107 = vector.shape_cast %106 : vector<1x32x32xbf16> to vector<32x32xbf16>
    %cst_27 = arith.constant dense<0.000000e+00> : vector<16x32xf32>
    %108 = tpu.matmul %105, %107, %cst_27 {dimension_numbers = #tpu.dot_dimension_numbers<[1], [0], [0], [1], [0, 0, 1, 1], [], []>} : vector<16x32xbf16>, vector<32x32xbf16>, vector<16x32xf32> -> vector<16x32xf32>
    %c0_28 = arith.constant 0 : index
    %c0_29 = arith.constant 0 : index
    %c0_30 = arith.constant 0 : index
    %109 = vector.load %arg6[%c0_28, %c0_29, %c0_30] : memref<1x1x32xf32, #tpu.memory_space<vmem>>, vector<1x1x32xf32>
    %110 = vector.shape_cast %109 : vector<1x1x32xf32> to vector<1x32xf32>
    %111 = vector.broadcast %110 : vector<1x32xf32> to vector<16x32xf32>
    %112 = arith.addf %108, %111 : vector<16x32xf32>
    %113 = arith.addf %3, %112 : vector<16x32xf32>
    %c0_31 = arith.constant 0 : index
    %c0_32 = arith.constant 0 : index
    %c0_33 = arith.constant 0 : index
    %114 = vector.load %arg11[%c0_31, %c0_32, %c0_33] : memref<1x1x32xf32, #tpu.memory_space<vmem>>, vector<1x1x32xf32>
    %115 = vector.shape_cast %114 : vector<1x1x32xf32> to vector<1x32xf32>
    %c0_34 = arith.constant 0 : index
    %c0_35 = arith.constant 0 : index
    %c0_36 = arith.constant 0 : index
    %116 = vector.load %arg12[%c0_34, %c0_35, %c0_36] : memref<1x1x32xf32, #tpu.memory_space<vmem>>, vector<1x1x32xf32>
    %117 = vector.shape_cast %116 : vector<1x1x32xf32> to vector<1x32xf32>
    %cst_37 = arith.constant dense<0.000000e+00> : vector<16xf32>
    %118 = vector.multi_reduction <add>, %113, %cst_37 [1] : vector<16x32xf32> to vector<16xf32>
    %119 = vector.shape_cast %118 : vector<16xf32> to vector<16x1xf32>
    %cst_38 = arith.constant 3.200000e+01 : f32
    %120 = vector.broadcast %cst_38 : f32 to vector<16x1xf32>
    %121 = arith.divf %119, %120 : vector<16x1xf32>
    %122 = vector.broadcast %121 : vector<16x1xf32> to vector<16x32xf32>
    %123 = arith.subf %113, %122 : vector<16x32xf32>
    %124 = arith.mulf %123, %123 : vector<16x32xf32>
    %cst_39 = arith.constant dense<0.000000e+00> : vector<16xf32>
    %125 = vector.multi_reduction <add>, %124, %cst_39 [1] : vector<16x32xf32> to vector<16xf32>
    %126 = vector.shape_cast %125 : vector<16xf32> to vector<16x1xf32>
    %cst_40 = arith.constant 3.200000e+01 : f32
    %127 = vector.broadcast %cst_40 : f32 to vector<16x1xf32>
    %128 = arith.divf %126, %127 : vector<16x1xf32>
    %129 = vector.broadcast %121 : vector<16x1xf32> to vector<16x32xf32>
    %130 = arith.subf %113, %129 : vector<16x32xf32>
    %cst_41 = arith.constant 9.99999974E-6 : f32
    %131 = vector.broadcast %cst_41 : f32 to vector<16x1xf32>
    %132 = arith.addf %128, %131 : vector<16x1xf32>
    %133 = math.rsqrt %132 : vector<16x1xf32>
    %134 = vector.broadcast %133 : vector<16x1xf32> to vector<16x32xf32>
    %135 = arith.mulf %130, %134 : vector<16x32xf32>
    %136 = vector.broadcast %115 : vector<1x32xf32> to vector<16x32xf32>
    %137 = arith.mulf %135, %136 : vector<16x32xf32>
    %138 = vector.broadcast %117 : vector<1x32xf32> to vector<16x32xf32>
    %139 = arith.addf %137, %138 : vector<16x32xf32>
    %140 = arith.truncf %139 : vector<16x32xf32> to vector<16x32xbf16>
    %c0_42 = arith.constant 0 : index
    %c0_43 = arith.constant 0 : index
    %c0_44 = arith.constant 0 : index
    %141 = vector.load %arg7[%c0_42, %c0_43, %c0_44] : memref<1x32x64xbf16, #tpu.memory_space<vmem>>, vector<1x32x64xbf16>
    %142 = vector.shape_cast %141 : vector<1x32x64xbf16> to vector<32x64xbf16>
    %cst_45 = arith.constant dense<0.000000e+00> : vector<16x64xf32>
    %143 = tpu.matmul %140, %142, %cst_45 {dimension_numbers = #tpu.dot_dimension_numbers<[1], [0], [0], [1], [0, 0, 1, 1], [], []>} : vector<16x32xbf16>, vector<32x64xbf16>, vector<16x64xf32> -> vector<16x64xf32>
    %c0_46 = arith.constant 0 : index
    %c0_47 = arith.constant 0 : index
    %c0_48 = arith.constant 0 : index
    %144 = vector.load %arg8[%c0_46, %c0_47, %c0_48] : memref<1x1x64xf32, #tpu.memory_space<vmem>>, vector<1x1x64xf32>
    %145 = vector.shape_cast %144 : vector<1x1x64xf32> to vector<1x64xf32>
    %146 = vector.broadcast %145 : vector<1x64xf32> to vector<16x64xf32>
    %147 = arith.addf %143, %146 : vector<16x64xf32>
    %cst_49 = arith.constant 0.000000e+00 : f32
    %148 = vector.broadcast %cst_49 : f32 to vector<16x64xf32>
    %149 = arith.maximumf %147, %148 : vector<16x64xf32>
    %150 = arith.truncf %149 : vector<16x64xf32> to vector<16x64xbf16>
    %c0_50 = arith.constant 0 : index
    %c0_51 = arith.constant 0 : index
    %c0_52 = arith.constant 0 : index
    %151 = vector.load %arg9[%c0_50, %c0_51, %c0_52] : memref<1x64x32xbf16, #tpu.memory_space<vmem>>, vector<1x64x32xbf16>
    %152 = vector.shape_cast %151 : vector<1x64x32xbf16> to vector<64x32xbf16>
    %cst_53 = arith.constant dense<0.000000e+00> : vector<16x32xf32>
    %153 = tpu.matmul %150, %152, %cst_53 {dimension_numbers = #tpu.dot_dimension_numbers<[1], [0], [0], [1], [0, 0, 1, 1], [], []>} : vector<16x64xbf16>, vector<64x32xbf16>, vector<16x32xf32> -> vector<16x32xf32>
    %c0_54 = arith.constant 0 : index
    %c0_55 = arith.constant 0 : index
    %c0_56 = arith.constant 0 : index
    %154 = vector.load %arg10[%c0_54, %c0_55, %c0_56] : memref<1x1x32xf32, #tpu.memory_space<vmem>>, vector<1x1x32xf32>
    %155 = vector.shape_cast %154 : vector<1x1x32xf32> to vector<1x32xf32>
    %156 = vector.broadcast %155 : vector<1x32xf32> to vector<16x32xf32>
    %157 = arith.addf %153, %156 : vector<16x32xf32>
    %158 = arith.addf %139, %157 : vector<16x32xf32>
    %c0_57 = arith.constant 0 : index
    %c0_58 = arith.constant 0 : index
    %c0_59 = arith.constant 0 : index
    %159 = vector.load %arg13[%c0_57, %c0_58, %c0_59] : memref<1x1x32xf32, #tpu.memory_space<vmem>>, vector<1x1x32xf32>
    %160 = vector.shape_cast %159 : vector<1x1x32xf32> to vector<1x32xf32>
    %c0_60 = arith.constant 0 : index
    %c0_61 = arith.constant 0 : index
    %c0_62 = arith.constant 0 : index
    %161 = vector.load %arg14[%c0_60, %c0_61, %c0_62] : memref<1x1x32xf32, #tpu.memory_space<vmem>>, vector<1x1x32xf32>
    %162 = vector.shape_cast %161 : vector<1x1x32xf32> to vector<1x32xf32>
    %cst_63 = arith.constant dense<0.000000e+00> : vector<16xf32>
    %163 = vector.multi_reduction <add>, %158, %cst_63 [1] : vector<16x32xf32> to vector<16xf32>
    %164 = vector.shape_cast %163 : vector<16xf32> to vector<16x1xf32>
    %cst_64 = arith.constant 3.200000e+01 : f32
    %165 = vector.broadcast %cst_64 : f32 to vector<16x1xf32>
    %166 = arith.divf %164, %165 : vector<16x1xf32>
    %167 = vector.broadcast %166 : vector<16x1xf32> to vector<16x32xf32>
    %168 = arith.subf %158, %167 : vector<16x32xf32>
    %169 = arith.mulf %168, %168 : vector<16x32xf32>
    %cst_65 = arith.constant dense<0.000000e+00> : vector<16xf32>
    %170 = vector.multi_reduction <add>, %169, %cst_65 [1] : vector<16x32xf32> to vector<16xf32>
    %171 = vector.shape_cast %170 : vector<16xf32> to vector<16x1xf32>
    %cst_66 = arith.constant 3.200000e+01 : f32
    %172 = vector.broadcast %cst_66 : f32 to vector<16x1xf32>
    %173 = arith.divf %171, %172 : vector<16x1xf32>
    %174 = vector.broadcast %166 : vector<16x1xf32> to vector<16x32xf32>
    %175 = arith.subf %158, %174 : vector<16x32xf32>
    %cst_67 = arith.constant 9.99999974E-6 : f32
    %176 = vector.broadcast %cst_67 : f32 to vector<16x1xf32>
    %177 = arith.addf %173, %176 : vector<16x1xf32>
    %178 = math.rsqrt %177 : vector<16x1xf32>
    %179 = vector.broadcast %178 : vector<16x1xf32> to vector<16x32xf32>
    %180 = arith.mulf %175, %179 : vector<16x32xf32>
    %181 = vector.broadcast %160 : vector<1x32xf32> to vector<16x32xf32>
    %182 = arith.mulf %180, %181 : vector<16x32xf32>
    %183 = vector.broadcast %162 : vector<1x32xf32> to vector<16x32xf32>
    %184 = arith.addf %182, %183 : vector<16x32xf32>
    %c1_i32 = arith.constant 1 : i32
    %185 = arith.cmpi slt, %arg1, %c1_i32 : i32
    %186 = arith.extui %185 : i1 to i32
    %c0_i32_68 = arith.constant 0 : i32
    %187 = arith.cmpi ne, %186, %c0_i32_68 : i32
    scf.if %187 {
      %c0_71 = arith.constant 0 : index
      %c0_72 = arith.constant 0 : index
      %191 = vector.load %arg17[%c0_71, %c0_72] : memref<16x32xf32, #tpu.memory_space<vmem>>, vector<16x32xf32>
      tpu.vector_store %arg17[%c0_71, %c0_72], %184 {strides = array<i32>} : memref<16x32xf32, #tpu.memory_space<vmem>>, vector<16x32xf32>,
    } else {
    }
    %c1_i32_69 = arith.constant 1 : i32
    %188 = arith.cmpi eq, %arg1, %c1_i32_69 : i32
    %189 = arith.extui %188 : i1 to i32
    %c0_i32_70 = arith.constant 0 : i32
    %190 = arith.cmpi ne, %189, %c0_i32_70 : i32
    scf.if %190 {
      %c0_71 = arith.constant 0 : index
      %c0_72 = arith.constant 0 : index
      %191 = vector.load %arg15[%c0_71, %c0_72] : memref<1x32xf32, #tpu.memory_space<vmem>>, vector<1x32xf32>
      %c0_73 = arith.constant 0 : index
      %c0_74 = arith.constant 0 : index
      %192 = vector.load %arg16[%c0_73, %c0_74] : memref<1x32xf32, #tpu.memory_space<vmem>>, vector<1x32xf32>
      %cst_75 = arith.constant dense<0.000000e+00> : vector<16xf32>
      %193 = vector.multi_reduction <add>, %184, %cst_75 [1] : vector<16x32xf32> to vector<16xf32>
      %194 = vector.shape_cast %193 : vector<16xf32> to vector<16x1xf32>
      %cst_76 = arith.constant 3.200000e+01 : f32
      %195 = vector.broadcast %cst_76 : f32 to vector<16x1xf32>
      %196 = arith.divf %194, %195 : vector<16x1xf32>
      %197 = vector.broadcast %196 : vector<16x1xf32> to vector<16x32xf32>
      %198 = arith.subf %184, %197 : vector<16x32xf32>
      %199 = arith.mulf %198, %198 : vector<16x32xf32>
      %cst_77 = arith.constant dense<0.000000e+00> : vector<16xf32>
      %200 = vector.multi_reduction <add>, %199, %cst_77 [1] : vector<16x32xf32> to vector<16xf32>
      %201 = vector.shape_cast %200 : vector<16xf32> to vector<16x1xf32>
      %cst_78 = arith.constant 3.200000e+01 : f32
      %202 = vector.broadcast %cst_78 : f32 to vector<16x1xf32>
      %203 = arith.divf %201, %202 : vector<16x1xf32>
      %204 = vector.broadcast %196 : vector<16x1xf32> to vector<16x32xf32>
      %205 = arith.subf %184, %204 : vector<16x32xf32>
      %cst_79 = arith.constant 9.99999974E-6 : f32
      %206 = vector.broadcast %cst_79 : f32 to vector<16x1xf32>
      %207 = arith.addf %203, %206 : vector<16x1xf32>
      %208 = math.rsqrt %207 : vector<16x1xf32>
      %209 = vector.broadcast %208 : vector<16x1xf32> to vector<16x32xf32>
      %210 = arith.mulf %205, %209 : vector<16x32xf32>
      %211 = vector.broadcast %191 : vector<1x32xf32> to vector<16x32xf32>
      %212 = arith.mulf %210, %211 : vector<16x32xf32>
      %213 = vector.broadcast %192 : vector<1x32xf32> to vector<16x32xf32>
      %214 = arith.addf %212, %213 : vector<16x32xf32>
      %c0_80 = arith.constant 0 : index
      %c0_81 = arith.constant 0 : index
      %215 = vector.load %arg17[%c0_80, %c0_81] : memref<16x32xf32, #tpu.memory_space<vmem>>, vector<16x32xf32>
      tpu.vector_store %arg17[%c0_80, %c0_81], %214 {strides = array<i32>} : memref<16x32xf32, #tpu.memory_space<vmem>>, vector<16x32xf32>,
    } else {
    }
    return
  }
  func.func @transform_0(%arg0: i32, %arg1: i32) -> (i32, i32) {
    %c0_i32 = arith.constant 0 : i32
    %c0_i32_0 = arith.constant 0 : i32
    return %arg0, %c0_i32 : i32, i32
  }
  func.func @transform_1(%arg0: i32, %arg1: i32) -> (i32, i32, i32) {
    %c0_i32 = arith.constant 0 : i32
    %c0_i32_0 = arith.constant 0 : i32
    %c0_i32_1 = arith.constant 0 : i32
    return %arg1, %c0_i32, %c0_i32_0 : i32, i32, i32
  }
  func.func @transform_2(%arg0: i32, %arg1: i32) -> (i32, i32, i32) {
    %c0_i32 = arith.constant 0 : i32
    %c0_i32_0 = arith.constant 0 : i32
    %c0_i32_1 = arith.constant 0 : i32
    return %arg1, %c0_i32, %c0_i32_0 : i32, i32, i32
  }
  func.func @transform_3(%arg0: i32, %arg1: i32) -> (i32, i32, i32) {
    %c0_i32 = arith.constant 0 : i32
    %c0_i32_0 = arith.constant 0 : i32
    %c0_i32_1 = arith.constant 0 : i32
    return %arg1, %c0_i32, %c0_i32_0 : i32, i32, i32
  }
  func.func @transform_4(%arg0: i32, %arg1: i32) -> (i32, i32, i32) {
    %c0_i32 = arith.constant 0 : i32
    %c0_i32_0 = arith.constant 0 : i32
    %c0_i32_1 = arith.constant 0 : i32
    return %arg1, %c0_i32, %c0_i32_0 : i32, i32, i32
  }
  func.func @transform_5(%arg0: i32, %arg1: i32) -> (i32, i32, i32) {
    %c0_i32 = arith.constant 0 : i32
    %c0_i32_0 = arith.constant 0 : i32
    %c0_i32_1 = arith.constant 0 : i32
    return %arg1, %c0_i32, %c0_i32_0 : i32, i32, i32
  }
  func.func @transform_6(%arg0: i32, %arg1: i32) -> (i32, i32, i32) {
    %c0_i32 = arith.constant 0 : i32
    %c0_i32_0 = arith.constant 0 : i32
    %c0_i32_1 = arith.constant 0 : i32
    return %arg1, %c0_i32, %c0_i32_0 : i32, i32, i32
  }
  func.func @transform_7(%arg0: i32, %arg1: i32) -> (i32, i32, i32) {
    %c0_i32 = arith.constant 0 : i32
    %c0_i32_0 = arith.constant 0 : i32
    %c0_i32_1 = arith.constant 0 : i32
    return %arg1, %c0_i32, %c0_i32_0 : i32, i32, i32
  }
  func.func @transform_8(%arg0: i32, %arg1: i32) -> (i32, i32, i32) {
    %c0_i32 = arith.constant 0 : i32
    %c0_i32_0 = arith.constant 0 : i32
    %c0_i32_1 = arith.constant 0 : i32
    return %arg1, %c0_i32, %c0_i32_0 : i32, i32, i32
  }
  func.func @transform_9(%arg0: i32, %arg1: i32) -> (i32, i32, i32) {
    %c0_i32 = arith.constant 0 : i32
    %c0_i32_0 = arith.constant 0 : i32
    %c0_i32_1 = arith.constant 0 : i32
    return %arg1, %c0_i32, %c0_i32_0 : i32, i32, i32
  }
  func.func @transform_10(%arg0: i32, %arg1: i32) -> (i32, i32, i32) {
    %c0_i32 = arith.constant 0 : i32
    %c0_i32_0 = arith.constant 0 : i32
    %c0_i32_1 = arith.constant 0 : i32
    return %arg1, %c0_i32, %c0_i32_0 : i32, i32, i32
  }
  func.func @transform_11(%arg0: i32, %arg1: i32) -> (i32, i32, i32) {
    %c0_i32 = arith.constant 0 : i32
    %c0_i32_0 = arith.constant 0 : i32
    %c0_i32_1 = arith.constant 0 : i32
    return %arg1, %c0_i32, %c0_i32_0 : i32, i32, i32
  }
  func.func @transform_12(%arg0: i32, %arg1: i32) -> (i32, i32, i32) {
    %c0_i32 = arith.constant 0 : i32
    %c0_i32_0 = arith.constant 0 : i32
    %c0_i32_1 = arith.constant 0 : i32
    return %arg1, %c0_i32, %c0_i32_0 : i32, i32, i32
  }
  func.func @transform_13(%arg0: i32, %arg1: i32) -> (i32, i32) {
    %c0_i32 = arith.constant 0 : i32
    %c0_i32_0 = arith.constant 0 : i32
    %c0_i32_1 = arith.constant 0 : i32
    return %c0_i32, %c0_i32_0 : i32, i32
  }
  func.func @transform_14(%arg0: i32, %arg1: i32) -> (i32, i32) {
    %c0_i32 = arith.constant 0 : i32
    %c0_i32_0 = arith.constant 0 : i32
    %c0_i32_1 = arith.constant 0 : i32
    return %c0_i32, %c0_i32_0 : i32, i32
  }
  func.func @transform_15(%arg0: i32, %arg1: i32) -> (i32, i32) {
    %c0_i32 = arith.constant 0 : i32
    %c0_i32_0 = arith.constant 0 : i32
    return %arg0, %c0_i32 : i32, i32
  }
}

</mosaic_0001>

<bundles_post_ra>
// kernel: tpu_custom_call.1
= control target key start
LH: loop header
LB: loop body
LE: loop exit
PB: predicated region body
PF: predicated region fallthrough
CT: control target
= control target key end

     0   :  { %s2817_s0 = inlined_call_operand.vmem [shape: f32[32,32], index: 0, kind: input, shape index: {}]   ;;  %s2818_s1 = inlined_call_operand.vmem [shape: bf16[2,32,96], index: 1, kind: input, shape index: {}]   ;;  %s2819_s2 = inlined_call_operand.hbm [shape: f32[2,1,96], index: 2, kind: input, shape index: {}]   ;;  %s2820_s3 = inlined_call_operand.vmem [shape: bf16[2,32,32], index: 3, kind: input, shape index: {}]   ;;  %s2821_s4 = inlined_call_operand.vmem [shape: f32[2,1,32], index: 4, kind: input, shape index: {}]   ;;  %s2822_s5 = inlined_call_operand.hbm [shape: bf16[2,32,64], index: 5, kind: input, shape index: {}]   ;;  %s2823_s6 = inlined_call_operand.vmem [shape: f32[2,1,64], index: 6, kind: input, shape index: {}]   ;;  %s2824_s7 = inlined_call_operand.vmem [shape: bf16[2,64,32], index: 7, kind: input, shape index: {}]   ;;  %s2825_s8 = inlined_call_operand.vmem [shape: f32[2,1,32], index: 8, kind: input, shape index: {}]   ;;  %s2826_s9 = inlined_call_operand.hbm [shape: f32[2,1,32], index: 9, kind: input, shape index: {}]   ;;  %s2827_s10 = inlined_call_operand.vmem [shape: f32[2,1,32], index: 10, kind: input, shape index: {}]   ;;  %s2828_s11 = inlined_call_operand.hbm [shape: f32[2,1,32], index: 11, kind: input, shape index: {}]   ;;  %s2829_s12 = inlined_call_operand.vmem [shape: f32[2,1,32], index: 12, kind: input, shape index: {}]   ;;  %s2830_s13 = inlined_call_operand.vmem [shape: f32[1,32], index: 13, kind: input, shape index: {}]   ;;  %s2831_s14 = inlined_call_operand.vmem [shape: f32[1,32], index: 14, kind: input, shape index: {}]   ;;  %s2832_s15 = inlined_call_operand.hbm [shape: f32[32,32], index: 15, kind: output, shape index: {}]  }
   0x1   :  { %2848 = sst [smem:[#allocation28_spill]] %s2817_s0 }
   0x2   :  { %2849 = sst [smem:[#allocation29_spill]] %s2818_s1 }
   0x3   :  { %2850 = sst [smem:[#allocation30_spill]] %s2819_s2 }
   0x4   :  { %2851 = sst [smem:[#allocation31_spill]] %s2820_s3 }
   0x5   :  { %2852 = sst [smem:[#allocation32_spill]] %s2821_s4 }
   0x6   :  { %2853 = sst [smem:[#allocation33_spill]] %s2822_s5 }
   0x7   :  { %2854 = sst [smem:[#allocation34_spill]] %s2823_s6 }
   0x8   :  { %2855 = sst [smem:[#allocation35_spill]] %s2824_s7 }
   0x9   :  { %2856 = sst [smem:[#allocation36_spill]] %s2825_s8 }
   0xa   :  { %2857 = sst [smem:[#allocation37_spill]] %s2826_s9 }
   0xb   :  { %2858 = sst [smem:[#allocation38_spill]] %s2827_s10 }
   0xc   :  { %2859 = sst [smem:[#allocation39_spill]] %s2828_s11 }
   0xd   :  { %2860 = sst [smem:[#allocation40_spill]] %s2829_s12 }
   0xe   :  { %2861 = sst [smem:[#allocation41_spill]] %s2830_s13 }
   0xf   :  { %2862 = sst [smem:[#allocation42_spill]] %s2831_s14 }
  0x10   :  { %2863 = sst [smem:[#allocation43_spill]] %s2832_s15 }
  0x11   :  { %20 = vsyncpa [#allocation3], 0 }
  0x12   :  { %22 = vsyncpa [#allocation3 + $0x1], 0 }
  0x13   :  { %23 = vsyncpa [#allocation6], 0 }
  0x14   :  { %25 = vsyncpa [#allocation6 + $0x1], 0 }
  0x15   :  { %26 = vsyncpa [#allocation9], 0 }
  0x16   :  { %28 = vsyncpa [#allocation9 + $0x1], 0 }
  0x17   :  { %29 = vsyncpa [#allocation4], 0 }
  0x18   :  { %31 = vsyncpa [#allocation4 + $0x1], 0  ;;  %s2383_s18 = smov 0   ;;  %s2385_s19 = smov 0  }
  0x19   :  { %s2387_s20 = smov 0   ;;  %s2389_s21 = smov 0  }
  0x1a   :  { %s2391_s22 = smov 0   ;;  %s2393_s23 = smov 0  }
  0x1b   :  { %s2395_s24 = smov 0   ;;  %s2397_s25 = smov 0  }
  0x1c   :  { %s2399_s26 = smov 0   ;;  %s2401_s27 = smov 0  }
  0x1d   :  { %s2403_s28 = smov 0  }
  0x1e LB: > { %2864 = sst [smem:[#allocation15_spill]] %s2243_s18  ;;  %s2437_s29 = sadd.s32 4294967295, %s2283_s28   ;;  %s2283_s28 = sphi %s2403_s28, %s37_s28   ;;  %s2279_s27 = sphi %s2401_s27, %s2921_s27   ;;  %s2275_s26 = sphi %s2399_s26, %s2920_s26   ;;  %s2271_s25 = sphi %s2397_s25, %s2919_s25   ;;  %s2267_s24 = sphi %s2395_s24, %s2924_s24   ;;  %s2263_s23 = sphi %s2393_s23, %s2917_s23   ;;  %s2259_s22 = sphi %s2391_s22, %s2916_s22   ;;  %s2255_s21 = sphi %s2389_s21, %s2915_s21   ;;  %s2251_s20 = sphi %s2387_s20, %s2914_s20   ;;  %s2247_s19 = sphi %s2385_s19, %s2923_s19   ;;  %s2243_s18 = sphi %s2383_s18, %s2922_s18  }
  0x1f   : > { %2865 = sst [smem:[#allocation16_spill]] %s2251_s20  ;;  %s1735_s30 = sadd.s32 4294967294, %s2283_s28  }
  0x20   : > { %2866 = sst [smem:[#allocation17_spill]] %s2259_s22  ;;  %s46_s16 = sadd.s32 1, %s2275_s26 }
  0x21   : > { %2867 = sst [smem:[#allocation18_spill]] %s2263_s23  ;;  %s49_s17 = sadd.s32 1, %s2279_s27 }
  0x22   : > { %2868 = sst [smem:[#allocation19_spill]] %s2275_s26  ;;  %p47_p0 = scmp.ge.s32.totalorder %s46_s16, 2 }
  0x23   : > { %2869 = sst [smem:[#allocation20_spill]] %s2279_s27  ;;  %s108_s15 = sadd.s32 1, %s2263_s23 }
  0x24   : > { %2870 = sst [smem:[#allocation21_spill]] %s2283_s28  ;;  %p115_p1 = scmp.ne.s32.totalorder %s2263_s23, %s2259_s22 }
  0x25   : > { %p116_p2 = scmp.eq.s32.totalorder %s2283_s28, 0  ;;  %s2926_s16 = smov (%p47_p0, %s46_s16), 0 }
  0x26   : > { %2871 = sst [smem:[#allocation22_spill]] %s2926_s16  ;;  %s2928_s17 = smov (!%p47_p0, %s49_s17), %s2279_s27 }
  0x27   : > { %s105_s14 = ssub.s32 %s2275_s26, %s2926_s16  ;;  %p2451_p3 = por %p116_p2, %p115_p1 }
  0x28   : > { %p51_p4 = scmp.ge.s32.totalorder %s2928_s17, 2  ;;  %p106_p5 = scmp.eq.s32.totalorder %s105_s14, 0 }
  0x29   : > { %p121_p6 = scmp.ne.s32.totalorder %s2259_s22, %s2255_s21  ;;  %p122_p7 = scmp.eq.s32.totalorder %s2437_s29, 0 }
  0x2a   : > { %s2930_s17 = smov (%p51_p4, %s2928_s17), 0  ;;  %s436_s7 = sadd.s32 1, %s2251_s20 }
  0x2b   : > { %2873 = sst [smem:[#allocation23_spill]] %s2930_s17  ;;  %p2462_p8 = por %p122_p7, %p121_p6 }
  0x2c   : > { %s2460_s12 = scalar_select %p106_p5, %s2263_s23, %s108_s15  }
  0x2d   : > { %s433_s10 = ssub.s32 %s2279_s27, %s2930_s17  ;;  %p446_p10 = scmp.ne.s32.totalorder %s2251_s20, %s2247_s19 }
  0x2e   : > { %2874 = sst [smem:[#allocation24_spill]] %s2460_s12  ;;  %p434_p9 = scmp.eq.s32.totalorder %s433_s10, 0 }
  0x2f   : > { %p447_p11 = scmp.eq.s32.totalorder %s2437_s29, 3  ;;  %p452_p13 = scmp.ne.s32.totalorder %s2247_s19, %s2243_s18 }
  0x30   : > { %s2473_s14 = scalar_select %p434_p9, %s2251_s20, %s436_s7  }
  0x31   : > { %p2475_p12 = por %p447_p11, %p446_p10  ;;  %p453_p0 = scmp.eq.s32.totalorder %s1735_s30, 3 }
  0x32   : > { %2876 = sst [smem:[#allocation25_spill]] %s2473_s14  ;;  %p1854_p1 = scmp.lt.s32.totalorder %s2283_s28, 4 }
  0x33   : > { %s2877_s21 = scalar_select %p2475_p12, 1, 0 }
  0x34   : > { %s2483_s15 = sand.u32 1, %s2263_s23   ;;  %p2485_p2 = por %p453_p0, %p452_p13 }
  0x35   : > { %2878 = sst [smem:[#allocation26_spill]] %s2877_s21  ;;  %s527_s10 = sand.u32 1, %s2283_s28  }
  0x36   : > { %s2879_s12 = scalar_select %p2485_p2, 1, 0 }
  0x37   : > { %p2492_p4 = pnand %p1854_p1, %p2451_p3  ;;  %s1738_s17 = sshll.u32 %s2483_s15, 4 }
  0x38   : > { %2880 = sst [smem:[#allocation27_spill]] %s2879_s12  ;;  %s1812_s30 = sshll.u32 %s2275_s26, 4 }
  0x39   : > { %s2882_s5 = sld [smem:[#allocation33_spill]]  ;;  %s531_s20 = scalar_lea.vmem [#allocation5], %s1738_s17 }
  0x3a   : > { %s539_s18 = sshll.u32 %s531_s20, 4  ;;  %p1741_p3 = scmp.ge.s32.totalorder %s2283_s28, 1  ;;  %s540_s18 = int_to_ptr.vmem [resolvable:$true] %s539_s18 }
  0x3b   : > { %s528_s13 = scalar_lea.sflag [#allocation6], %s527_s10  ;;  %s2285_s12 = smov 64  }
  0x3c   : > { %s2286_s8 = smov 4   ;;  %p613_p5 = scmp.lt.s32.totalorder %s2283_s28, 5 }
  0x3d   : > { %s2884_s2 = sld [smem:[#allocation30_spill]]  ;;  %s497_s10 = scalar_lea.sflag [#allocation3], %s2483_s15 }
  0x3e   : > { %p2505_p6 = pnand %p1741_p3, %p613_p5  ;;  %s2885_s9 = sld [smem:[#allocation37_spill]] }
  0x3f   : > { %s536_s14 = scalar_lea.hbm %s2882_s5, %s1812_s30  ;;  %s2886_s11 = sld [smem:[#allocation39_spill]] }
  0x40   : > { %s537_s21 = sshll.u32 %s536_s14, 4  ;;  %s499_s14 = scalar_lea.vmem [#allocation2], %s2483_s15  ;;  %s538_s21 = int_to_ptr.hbm [resolvable:$true] %s537_s21 }
  0x41   : > { %1843 = dma.hbm_to_vmem [thread:$0]  (!%p2492_p4), %s538_s21, 256, %s540_s18, %s528_s13, %s2285_s12, %s2285_s12, %s2286_s8  }
  0x42   : > { %s506_s30 = sshll.u32 %s499_s14, 4  ;;  %s572_s21 = scalar_lea.vmem [#allocation7], %s2483_s15  ;;  %s507_s30 = int_to_ptr.vmem [resolvable:$true] %s506_s30 }
  0x43   : > { %s502_s17 = scalar_lea.hbm %s2884_s2, %s2275_s26  ;;  %s579_s28 = sshll.u32 %s572_s21, 4  ;;  %s580_s28 = int_to_ptr.vmem [resolvable:$true] %s579_s28 }
  0x44   : > { %s504_s5 = sshll.u32 %s502_s17, 4  ;;  %s575_s18 = scalar_lea.hbm %s2885_s9, %s2275_s26  ;;  %s505_s5 = int_to_ptr.hbm [resolvable:$true] %s504_s5 }
  0x45   : > { %1840 = dma.hbm_to_vmem [thread:$0]  (!%p2492_p4), %s505_s5, 16, %s507_s30, %s497_s10  }
  0x46   : > { %s577_s20 = sshll.u32 %s575_s18, 4  ;;  %s598_s14 = scalar_lea.hbm %s2886_s11, %s2275_s26  ;;  %s578_s20 = int_to_ptr.hbm [resolvable:$true] %s577_s20 }
  0x47   : > { %1846 = dma.hbm_to_vmem [thread:$0]  (!%p2492_p4), %s578_s20, 16, %s580_s28, %s528_s13  }
  0x48   : > { %s600_s2 = sshll.u32 %s598_s14, 4  ;;  %s595_s6 = scalar_lea.vmem [#allocation8], %s2483_s15  ;;  %s601_s2 = int_to_ptr.hbm [resolvable:$true] %s600_s2 }
  0x49   : > { %s602_s4 = sshll.u32 %s595_s6, 4  ;;  %s593_s5 = scalar_lea.sflag [#allocation9], %s2483_s15  ;;  %s603_s4 = int_to_ptr.vmem [resolvable:$true] %s602_s4 }
  0x4a   : > { %1849 = dma.hbm_to_vmem [thread:$0]  (!%p2492_p4), %s601_s2, 16, %s603_s4, %s593_s5  }
  0x4b   : > { %617 = sbr.rel (%p2505_p6) target bundleno = 2336 (0x920), region = 80  ;;  %s2535_s30 = sand.u32 (!%p2505_p6), 1, %s2259_s22  }
  0x4c   : > { %s620_s28 = scalar_lea.sflag (!%p2505_p6), [#allocation3], %s2535_s30 }
  0x50   : > { %2226 = dma.done.wait (%p2462_p8), %s620_s28, 16  }
  0x51   : > { %2228 = vsyncadd (%p2462_p8), %s620_s28, 4294967280  ;;  %s628_s2 = sand.u32 1, %s2437_s29   ;;  %s1742_s4 = sshll.u32 %s2535_s30, 4 }
  0x52   : > { %s629_s6 = scalar_lea.sflag [#allocation6], %s628_s2  ;;  %s2545_s15 = scalar_lea.vmem [#allocation5], %s1742_s4 }
  0x53   : > { %2230 = dma.done.wait (%p2462_p8), %s629_s6, 272  }
  0x54   : > { %2232 = vsyncadd (%p2462_p8), %s629_s6, 4294967024  ;;  %s648_s23 = scalar_lea.sflag [#allocation9], %s2535_s30 }
  0x55   : > { %2234 = dma.done.wait (%p2462_p8), %s648_s23, 16  }
  0x56   : > { %2236 = vsyncadd (%p2462_p8), %s648_s23, 4294967280  ;;  %s2845_s29 = sand.u32 1, %s2247_s19   ;;  %s1744_s8 = sshll.u32 %s2271_s25, 1 }
  0x57   : > { %s1743_s12 = sshll.u32 %s2845_s29, 4  ;;  %p746_p7 = scmp.lt.s32.totalorder %s1744_s8, 3 }
  0x58   : > { %p751_p9 = scmp.lt.s32.totalorder %s2267_s24, 1  ;;  %s2887_s0 = sld [smem:[#allocation28_spill]] }
  0x59   : > { %s2932_s8 = smov (!%p746_p7, %s1744_s8), 3  ;;  %s2888_s1 = sld [smem:[#allocation29_spill]] }
  0x5a   : > { %s2564_s18 = scalar_select %p751_p9, %s2267_s24, 1 }
  0x5b   : > { %s1745_s16 = sshll.u32 %s2932_s8, 3  ;;  %s2889_s3 = sld [smem:[#allocation31_spill]] }
  0x5c   : > { %s1813_s17 = sshll.u32 %s2564_s18, 4  ;;  %s2891_s9 = sld [smem:[#allocation34_spill]] }
  0x5d   : > { %s1815_s21 = sshll.u32 %s2564_s18, 5  ;;  %s2894_s4 = sld [smem:[#allocation38_spill]] }
  0x5e   : > { %s749_s27 = scalar_lea.vmem %s2887_s0, %s1745_s16  ;;  %s2892_s0 = sld [smem:[#allocation36_spill]] }
  0x5f   : > { %s755_s28 = scalar_lea.vmem %s2888_s1, %s1813_s17  ;;  %s2893_s1 = sld [smem:[#allocation35_spill]] }
  0x60   : > { %s2895_s23 = sld [smem:[#allocation40_spill]]  ;;  %s2604_s13 = scalar_lea.vmem [#allocation10], %s1743_s12 }
  0x61   : > { %s2576_s6 = scalar_lea.vmem %s2889_s3, %s1813_s17  ;;  %p1752_p8 = scmp.ne.s32.totalorder %s2267_s24, 0 }
  0x62   : > { %s766_s11 = scalar_lea.vmem %s2891_s9, %s2564_s18 }
  0x63   : > { %s777_s3 = scalar_lea.vmem %s2894_s4, %s2564_s18  ;;  %786 = sbr.rel (%p1752_p8) target bundleno = 107 (0x6b), region = 100 }
  0x64   : > { %s774_s26 = scalar_lea.vmem %s2892_s0, %s2564_s18 }
  0x65   : > { %s2594_s22 = scalar_lea.vmem %s2893_s1, %s1815_s21 }
  0x66   : > { %s780_s7 = scalar_lea.vmem %s2895_s23, %s2564_s18 }
  0x68   : > { %v787_v0 = vld [vmem:[%s749_s27] sm:$0xff]  ;;  %vm789_vm0 = vcmask 261120   ;;  %v788_v1 = vld [vmem:[%s749_s27 + $0x8] sm:$0xff] }
  0x69   : > { %790 = vst.msk [vmem:[%s2604_s13] sm:$0xff] %vm789_vm0, %v787_v0 }
  0x6a   : > { %791 = vst.msk [vmem:[%s2604_s13 + $0x8] sm:$0xff] %vm789_vm0, %v788_v1 }
  0x6b PF: > { %v1817_v2 = vld [vmem:[%s755_s28 + $0x8] sm:$0xff]  ;;  %v1816_v3 = vld [vmem:[%s755_s28] sm:$0xff]  ;;  %vm815_vm1 = vcmask 261120   ;;  %s2896_s0 = scalar_lea.vmem [#allocation2], %s2535_s30  ;;  %s2287_s1 = smov 104   ;;  %vm842_vm2 = vcmask 64512  }
  0x6c   : > { %825 = vmatpush.bf16.msra.mxu0 %v1817_v2  ;;  %v1977_v8 = vld [vmem:[%s2896_s0] ss:$0 sm:$0xff]  ;;  %s2288_s9 = smov 120   ;;  %s2289_s12 = smov 96   ;;  %vm863_vm3 = vcmask 130048   ;;  %vm1160_vm4 = vcmask 195584  }
  0x6d   : > { %s2290_s27 = smov 80   ;;  %s2291_s28 = smov 72   ;;  %vm1343_vm12 = vcmask 523264  }
  0x6e   : > { %s2292_s8 = smov 88   ;;  %s2293_s21 = smov 112  }
  0x6f   : > { %s2294_s16 = smov 64   ;;  %s2295_s20 = smov 56  }
  0x70   : > { %v2610_v4 = vld [vmem:[%s2604_s13] sm:$0xff]  ;;  %826 = vmatpush.bf16.msra.mxu0 %v1816_v3  ;;  %s2296_s14 = smov 40   ;;  %s2297_s5 = smov 48  }
  0x71   : > { %v2613_v5 = vld [vmem:[%s2604_s13 + $0x8] sm:$0xff]  ;;  %s2298_s17 = smov 8   ;;  %s2299_s2 = smov 24  }
  0x72   : > { %v794_v6 = vpack.c.bf16 %v2613_v5, %v2610_v4  ;;  %s2300_s4 = smov 16   ;;  %s2897_s10 = sld [smem:[#allocation32_spill]] }
  0x73   : > { %p1805_p10 = scmp.ge.s32.totalorder %s2267_s24, 1 }
  0x74   : > { %1761 = vmatmul.msk.bf16.vlgmr.msra.gmra.mxu0 %vm815_vm1, %v794_v6 }
  0x78   : > { %s2898_s23 = scalar_lea.vmem %s2897_s10, %s2564_s18 }
  0xf1   : > { %v828_v7 = vpop.f32.mrf.mxu0 }
  0xf2   : > { %v829_v9 = vadd.f32 %v1977_v8, %v828_v7 }
  0xf4   : > { %v833_v11 = vpack.c.bf16 %v829_v9, %v829_v9 }
  0xf6   : > { %v837_v14 = vunpack.c.l.b16 %v833_v11 }
  0xf9   : > { %v830_v10 = vpop.f32.mrf.mxu0 }
  0xfa   : > { %v831_v12 = vadd.f32 %v1977_v8, %v830_v10 }
  0xfc   : > { %v834_v13 = vpack.c.bf16 %v831_v12, %v831_v12 }
  0xfe   : > { %v838_v15 = vunpack.c.l.b16 %v834_v13 }
 0x100   : > { %v2620_v16 = vpack.c.b16 %v838_v15, %v837_v14 }
 0x102   : > { %1059 = vrot.lane.b32.xlu2 %v2620_v16, %s2287_s1  ;;  %913 = vrot.lane.b32.xlu1 %v2620_v16, %s2288_s9 }
 0x103   : > { %840 = vrot.lane.b32.xlu0 %v2620_v16, %s2289_s12 }
 0x10a   : > { %988 = vrot.lane.b32.xlu2 %v2620_v16, %s2290_s27  ;;  %1061 = vrot.lane.b32.xlu1 %v2620_v16, %s2291_s28 }
 0x10b   : > { %915 = vrot.lane.b32.xlu0 %v2620_v16, %s2292_s8 }
 0x113   : > { %986 = vrot.lane.b32.xlu0 %v2620_v16, %s2293_s21 }
 0x15c   : > { %v1060_v17 = vpop.permute.xlu2 %1059 }
 0x164   : > { %v989_v18 = vpop.permute.xlu2 %988 }
 0x165   : > { %v994_v19 = vsel %vm842_vm2, %v989_v18, 0 }
 0x166   : > { %1003 = vmatpush.bf16.xpose.msrb.mxu0 %v994_v19 }
 0x174   : > { %v914_v20 = vpop.permute.xlu1 %913 }
 0x175   : > { %v841_v21 = vpop.permute.xlu0 %840 }
 0x176   : > { %v847_v22 = vsel %vm842_vm2, %v841_v21, 0 }
 0x177   : > { %856 = vmatpush.bf16.xpose.msra.mxu1 %v847_v22 }
 0x17c   : > { %v1062_v23 = vpop.permute.xlu1 %1061 }
 0x17d   : > { %v916_v24 = vpop.permute.xlu0 %915  ;;  %v1067_v25 = vsel %vm842_vm2, %v1062_v23, 0 }
 0x17e   : > { %1762 = vmatmul.msk.bf16.vlgmr.msra.gmra.mxu1 %vm842_vm2, %v2620_v16  ;;  %v921_v26 = vsel %vm842_vm2, %v916_v24, 0 }
 0x17f   : > { %930 = vmatpush.bf16.xpose.msra.mxu3 %v921_v26 }
 0x185   : > { %v987_v27 = vpop.permute.xlu0 %986 }
 0x186   : > { %1764 = vmatmul.msk.bf16.vlgmr.msra.gmra.mxu3 %vm842_vm2, %v914_v20  ;;  %1766 = vmatmul.msk.bf16.vlgmr.msrb.gmra.mxu0 %vm842_vm2, %v987_v27 }
 0x187   : > { %1076 = vmatpush.bf16.xpose.msrb.mxu3 %v1067_v25 }
 0x196   : > { %1768 = vmatmul.msk.bf16.vlgmr.msrb.gmra.mxu3 %vm842_vm2, %v1060_v17 }
 0x1fb   : > { %v858_v28 = vpop.f32.mrf.mxu1 }
 0x1fc   : > { %v864_v29 = vsel %vm863_vm3, %v858_v28, -inf }
 0x1fd   : > { %865 = vmax.xlane.f32.xlu1 %v864_v29 }
 0x203   : > { %v860_v30 = vpop.f32.mrf.mxu1  ;;  %v1005_v31 = vpop.f32.mrf.mxu0 }
 0x204   : > { %v867_v32 = vsel %vm863_vm3, %v860_v30, -inf  ;;  %v1010_v39 = vsel %vm863_vm3, %v1005_v31, -inf }
 0x205   : > { %868 = vmax.xlane.f32.xlu2 %v867_v32 }
 0x209   : > { %v932_v33 = vpop.f32.mrf.mxu3 }
 0x20a   : > { %v937_v34 = vsel %vm863_vm3, %v932_v33, -inf }
 0x20b   : > { %938 = vmax.xlane.f32.xlu0 %v937_v34  ;;  %v1007_v35 = vpop.f32.mrf.mxu0 }
 0x20c   : > { %v1013_v36 = vsel %vm863_vm3, %v1007_v35, -inf }
 0x20d   : > { %1014 = vmax.xlane.f32.xlu1 %v1013_v36 }
 0x211   : > { %v934_v37 = vpop.f32.mrf.mxu3 }
 0x212   : > { %v940_v38 = vsel %vm863_vm3, %v934_v37, -inf }
 0x213   : > { %941 = vmax.xlane.f32.xlu2 %v940_v38  ;;  %1011 = vmax.xlane.f32.xlu0 %v1010_v39 }
 0x219   : > { %v1078_v40 = vpop.f32.mrf.mxu3 }
 0x21a   : > { %v1083_v41 = vsel %vm863_vm3, %v1078_v40, -inf }
 0x21b   : > { %1084 = vmax.xlane.f32.xlu1 %v1083_v41 }
 0x221   : > { %v1080_v42 = vpop.f32.mrf.mxu3 }
 0x222   : > { %v1086_v43 = vsel %vm863_vm3, %v1080_v42, -inf }
 0x223   : > { %1087 = vmax.xlane.f32.xlu2 %v1086_v43 }
 0x234   : > { %893 = vrot.lane.b32.xlu1 %v2620_v16, %s2294_s16 }
 0x23b   : > { %966 = vrot.lane.b32.xlu2 %v2620_v16, %s2295_s20 }
 0x270   : > { %v866_v44 = vpop.xlane.xlu1 %865 }
 0x271   : > { %v870_v45 = vsub.f32 %v858_v28, %v866_v44 }
 0x273   : > { %v872_v46 = vmul.f32 1.442695, %v870_v45 }
 0x275   : > { %1985 = vpow2.f32 %v872_v46 }
 0x278   : > { %v869_v47 = vpop.xlane.xlu2 %868 }
 0x279   : > { %v871_v48 = vsub.f32 %v860_v30, %v869_v47 }
 0x27b   : > { %v2648_v49 = vpop.eup %1985  ;;  %v874_v50 = vmul.f32 1.442695, %v871_v48 }
 0x27c   : > { %v876_v51 = vsel %vm863_vm3, %v2648_v49, 0.0 }
 0x27d   : > { %1987 = vpow2.f32 %v874_v50  ;;  %877 = vadd.xlane.f32.xlu2 %v876_v51 }
 0x27e   : > { %v939_v52 = vpop.xlane.xlu0 %938 }
 0x27f   : > { %v943_v53 = vsub.f32 %v932_v33, %v939_v52 }
 0x280   : > { %v1015_v54 = vpop.xlane.xlu1 %1014 }
 0x281   : > { %v945_v55 = vmul.f32 1.442695, %v943_v53  ;;  %v1017_v56 = vsub.f32 %v1007_v35, %v1015_v54 }
 0x283   : > { %v1988_v57 = vpop.eup %1987  ;;  %1989 = vpow2.f32 %v945_v55  ;;  %v1020_v58 = vmul.f32 1.442695, %v1017_v56 }
 0x284   : > { %v879_v59 = vsel %vm863_vm3, %v1988_v57, 0.0 }
 0x285   : > { %1991 = vpow2.f32 %v1020_v58  ;;  %880 = vadd.xlane.f32.xlu0 %v879_v59 }
 0x286   : > { %v942_v60 = vpop.xlane.xlu2 %941  ;;  %v1012_v61 = vpop.xlane.xlu0 %1011 }
 0x287   : > { %v944_v62 = vsub.f32 %v934_v37, %v942_v60  ;;  %v1016_v63 = vsub.f32 %v1005_v31, %v1012_v61 }
 0x289   : > { %v1990_v0 = vpop.eup %1989  ;;  %v947_v1 = vmul.f32 1.442695, %v944_v62  ;;  %v1018_v2 = vmul.f32 1.442695, %v1016_v63 }
 0x28a   : > { %v949_v3 = vsel %vm863_vm3, %v1990_v0, 0.0 }
 0x28b   : > { %v2654_v6 = vpop.eup %1991  ;;  %1993 = vpow2.f32 %v947_v1  ;;  %950 = vadd.xlane.f32.xlu2 %v949_v3 }
 0x28c   : > { %1995 = vpow2.f32 %v1018_v2  ;;  %v1025_v7 = vsel %vm863_vm3, %v2654_v6, 0.0 }
 0x28d   : > { %1026 = vadd.xlane.f32.xlu0 %v1025_v7 }
 0x28e   : > { %v1085_v8 = vpop.xlane.xlu1 %1084 }
 0x28f   : > { %v1089_v9 = vsub.f32 %v1078_v40, %v1085_v8 }
 0x291   : > { %v1994_v10 = vpop.eup %1993  ;;  %v1091_v11 = vmul.f32 1.442695, %v1089_v9 }
 0x292   : > { %v2658_v12 = vpop.eup %1995  ;;  %v952_v14 = vsel %vm863_vm3, %v1994_v10, 0.0 }
 0x293   : > { %1997 = vpow2.f32 %v1091_v11  ;;  %v1022_v13 = vsel %vm863_vm3, %v2658_v12, 0.0 }
 0x294   : > { %1023 = vadd.xlane.f32.xlu1 %v1022_v13 }
 0x295   : > { %953 = vadd.xlane.f32.xlu0 %v952_v14 }
 0x296   : > { %v1088_v15 = vpop.xlane.xlu2 %1087 }
 0x297   : > { %v1090_v17 = vsub.f32 %v1080_v42, %v1088_v15 }
 0x299   : > { %v1998_v18 = vpop.eup %1997  ;;  %v1093_v19 = vmul.f32 1.442695, %v1090_v17 }
 0x29a   : > { %v1095_v20 = vsel %vm863_vm3, %v1998_v18, 0.0 }
 0x29b   : > { %1999 = vpow2.f32 %v1093_v19 }
 0x29d   : > { %1096 = vadd.xlane.f32.xlu0 %v1095_v20  ;;  %v1819_v20 = vld [vmem:[%s2576_s6 + $0x8] sm:$0xff] }
 0x29e   : > { %v967_v24 = vpop.permute.xlu2 %966  ;;  %1193 = vmatpush.bf16.msra.mxu0 %v1819_v20 }
 0x2a1   : > { %v2000_v21 = vpop.eup %1999 }
 0x2a2   : > { %v1098_v22 = vsel %vm863_vm3, %v2000_v21, 0.0 }
 0x2a3   : > { %1112 = vrot.lane.b32.xlu2 %v2620_v16, %s2296_s14 }
 0x2a5   : > { %1099 = vadd.xlane.f32.xlu0 %v1098_v22 }
 0x2a6   : > { %v894_v23 = vpop.permute.xlu1 %893 }
 0x2a7   : > { %906 = vmatpush.bf16.msra.mxu2 %v894_v23 }
 0x2ab   : > { %979 = vmatpush.bf16.msrb.mxu2 %v967_v24 }
 0x2b9   : > { %1039 = vrot.lane.b32.xlu0 %v2620_v16, %s2297_s5 }
 0x2f0   : > { %v878_v25 = vpop.xlane.xlu2 %877 }
 0x2f1   : > { %2001 = vrcp.f32 %v878_v25 }
 0x2f7   : > { %v2002_v27 = vpop.eup %2001 }
 0x2f8   : > { %v881_v26 = vpop.xlane.xlu0 %880  ;;  %v884_v28 = vmul.f32 %v2002_v27, %v2648_v49 }
 0x2f9   : > { %2003 = vrcp.f32 %v881_v26 }
 0x2fa   : > { %v886_v33 = vpack.c.bf16 %v884_v28, %v884_v28 }
 0x2fc   : > { %v890_v35 = vunpack.c.l.b16 %v886_v33 }
 0x2fe   : > { %v951_v29 = vpop.xlane.xlu2 %950 }
 0x2ff   : > { %v2004_v30 = vpop.eup %2003  ;;  %2005 = vrcp.f32 %v951_v29 }
 0x300   : > { %v1027_v31 = vpop.xlane.xlu0 %1026  ;;  %v885_v32 = vmul.f32 %v2004_v30, %v1988_v57 }
 0x302   : > { %v887_v34 = vpack.c.bf16 %v885_v32, %v885_v32 }
 0x304   : > { %v891_v36 = vunpack.c.l.b16 %v887_v34 }
 0x305   : > { %v2006_v39 = vpop.eup %2005 }
 0x306   : > { %v1113_v37 = vpop.permute.xlu2 %1112  ;;  %v892_v38 = vpack.c.b16 %v891_v36, %v890_v35  ;;  %v957_v40 = vmul.f32 %v2006_v39, %v1990_v0 }
 0x307   : > { %v1024_v48 = vpop.xlane.xlu1 %1023 }
 0x308   : > { %1763 = vmatmul.msk.bf16.vlgmr.msra.gmra.mxu2 %vm863_vm3, %v892_v38  ;;  %v954_v16 = vpop.xlane.xlu0 %953  ;;  %v959_v42 = vpack.c.bf16 %v957_v40, %v957_v40  ;;  %v1978_v38 = vld [vmem:[%s2898_s23] ss:$0 sm:$0xff] }
 0x309   : > { %1125 = vmatpush.bf16.msra.mxu2 %v1113_v37  ;;  %2007 = vrcp.f32 %v954_v16 }
 0x30a   : > { %v963_v46 = vunpack.c.l.b16 %v959_v42 }
 0x30f   : > { %v2008_v41 = vpop.eup %2007 }
 0x310   : > { %v958_v43 = vmul.f32 %v2008_v41, %v1994_v10  ;;  %v1097_v44 = vpop.xlane.xlu0 %1096 }
 0x311   : > { %2009 = vrcp.f32 %v1097_v44 }
 0x312   : > { %v960_v45 = vpack.c.bf16 %v958_v43, %v958_v43  ;;  %2011 = vrcp.f32 %v1024_v48 }
 0x314   : > { %v964_v47 = vunpack.c.l.b16 %v960_v45 }
 0x316   : > { %v965_v49 = vpack.c.b16 %v964_v47, %v963_v46  ;;  %v2301_v46 = vmov 32.0  }
 0x317   : > { %v2010_v51 = vpop.eup %2009 }
 0x318   : > { %1765 = vmatmul.msk.bf16.vlgmr.msrb.gmra.mxu2 %vm863_vm3, %v965_v49  ;;  %v1100_v50 = vpop.xlane.xlu0 %1099  ;;  %v1103_v52 = vmul.f32 %v2010_v51, %v1998_v18  ;;  %v2012_v53 = vpop.eup %2011 }
 0x319   : > { %2013 = vrcp.f32 %v1100_v50  ;;  %v1030_v58 = vmul.f32 %v2012_v53, %v2658_v12 }
 0x31a   : > { %2015 = vrcp.f32 %v1027_v31  ;;  %v1105_v56 = vpack.c.bf16 %v1103_v52, %v1103_v52 }
 0x31b   : > { %v1032_v63 = vpack.c.bf16 %v1030_v58, %v1030_v58  ;;  %2017 = vrcp.f32 %v2301_v46 }
 0x31c   : > { %v1109_v61 = vunpack.c.l.b16 %v1105_v56 }
 0x31d   : > { %v1036_v2 = vunpack.c.l.b16 %v1032_v63 }
 0x31f   : > { %v2014_v54 = vpop.eup %2013 }
 0x320   : > { %v2016_v55 = vpop.eup %2015  ;;  %v1104_v57 = vmul.f32 %v2014_v54, %v2000_v21  ;;  %v1818_v21 = vld [vmem:[%s2576_s6] sm:$0xff] }
 0x321   : > { %v1031_v60 = vmul.f32 %v2016_v55, %v2654_v6  ;;  %1194 = vmatpush.bf16.msra.mxu0 %v1818_v21  ;;  %v2018_v47 = vpop.eup %2017 }
 0x322   : > { %v1106_v59 = vpack.c.bf16 %v1104_v57, %v1104_v57  ;;  %v1212_v48 = vmul.f32 32.0, %v2018_v47  ;;  %vm1216_vm5 = vweird.f32 %v2018_v47 }
 0x323   : > { %v1033_v1 = vpack.c.bf16 %v1031_v60, %v1031_v60 }
 0x324   : > { %v1110_v62 = vunpack.c.l.b16 %v1106_v59  ;;  %v1213_v49 = vsub.f32 1.0, %v1212_v48 }
 0x325   : > { %v1037_v3 = vunpack.c.l.b16 %v1033_v1  ;;  %v1820_v1 = vld [vmem:[%s2545_s15] sm:$0xff] }
 0x326   : > { %v1111_v0 = vpack.c.b16 %v1110_v62, %v1109_v61  ;;  %v1214_v50 = vmul.f32 %v2018_v47, %v1213_v49  ;;  %v1821_v61 = vld [vmem:[%s2545_s15 + $0x8] sm:$0xff]  ;;  %s2899_s15 = scalar_lea.vmem [#allocation7], %s2535_s30 }
 0x327   : > { %v1038_v8 = vpack.c.b16 %v1037_v3, %v1036_v2  ;;  %v1825_v2 = vld [vmem:[%s2594_s22 + $0x18] sm:$0xff]  ;;  %v1979_v21 = vld [vmem:[%s2899_s15] ss:$0 sm:$0xff] }
 0x328   : > { %1769 = vmatmul.msk.bf16.vlgmr.msra.gmra.mxu2 %vm863_vm3, %v1111_v0  ;;  %v1215_v51 = vadd.f32 %v2018_v47, %v1214_v50  ;;  %1351 = vmatpush.bf16.msra.mxu3 %v1825_v2 }
 0x32b   : > { %v1040_v7 = vpop.permute.xlu0 %1039 }
 0x32c   : > { %1052 = vmatpush.bf16.msrb.mxu1 %v1040_v7 }
 0x32f   : > { %1767 = vmatmul.msk.bf16.vlgmr.msrb.gmra.mxu1 %vm863_vm3, %v1038_v8 }
 0x330   : > { %1296 = vmatpush.bf16.msra.mxu1 %v1821_v61 }
 0x334   : > { %1297 = vmatpush.bf16.msra.mxu1 %v1820_v1 }
 0x38b   : > { %v908_v9 = vpop.f32.mrf.mxu2 }
 0x393   : > { %v910_v10 = vpop.f32.mrf.mxu2 }
 0x39b   : > { %v981_v11 = vpop.f32.mrf.mxu2 }
 0x3a3   : > { %v983_v12 = vpop.f32.mrf.mxu2 }
 0x3a4   : > { %v1962_v6 = vpack.i.bf16 %v983_v12, %v981_v11 }
 0x3a6   : > { %1963 = vrot.lane.b32.xlu2 %v1962_v6, %s2298_s17 }
 0x3ab   : > { %v1127_v13 = vpop.f32.mrf.mxu2 }
 0x3ac   : > { %v1054_v14 = vpop.f32.mrf.mxu1 }
 0x3b3   : > { %v1129_v15 = vpop.f32.mrf.mxu2 }
 0x3b4   : > { %v1972_v17 = vpack.i.bf16 %v1129_v15, %v1127_v13  ;;  %v1056_v18 = vpop.f32.mrf.mxu1 }
 0x3b5   : > { %v1967_v19 = vpack.i.bf16 %v1056_v18, %v1054_v14 }
 0x3b6   : > { %1973 = vrot.lane.b32.xlu0 %v1972_v17, %s2299_s2 }
 0x3b7   : > { %1968 = vrot.lane.b32.xlu2 %v1967_v19, %s2300_s4 }
 0x400   : > { %v1964_v22 = vpop.permute.xlu2 %1963 }
 0x401   : > { %v1966_v24 = vunpack.i.h.bf16 %v1964_v22  ;;  %v1965_v25 = vunpack.i.l.bf16 %v1964_v22 }
 0x403   : > { %v1157_v29 = vsel %vm842_vm2, %v910_v10, %v1966_v24  ;;  %v1156_v30 = vsel %vm842_vm2, %v908_v9, %v1965_v25  ;;  %v1980_v25 = vld [vmem:[%s777_s3] ss:$0 sm:$0xff] }
 0x411   : > { %v1969_v23 = vpop.permute.xlu2 %1968 }
 0x412   : > { %v1971_v26 = vunpack.i.h.bf16 %v1969_v23  ;;  %v1970_v27 = vunpack.i.l.bf16 %v1969_v23 }
 0x414   : > { %v1159_v33 = vsel %vm863_vm3, %v1157_v29, %v1971_v26  ;;  %v1158_v34 = vsel %vm863_vm3, %v1156_v30, %v1970_v27 }
 0x428   : > { %v1974_v28 = vpop.permute.xlu0 %1973 }
 0x429   : > { %v1976_v31 = vunpack.i.h.bf16 %v1974_v28  ;;  %v1975_v32 = vunpack.i.l.bf16 %v1974_v28 }
 0x42b   : > { %v1162_v35 = vsel %vm1160_vm4, %v1159_v33, %v1976_v31  ;;  %v1161_v36 = vsel %vm1160_vm4, %v1158_v34, %v1975_v32  ;;  %v1824_v32 = vld [vmem:[%s2594_s22 + $0x10] sm:$0xff]  ;;  %v1823_v33 = vld [vmem:[%s2594_s22 + $0x8] sm:$0xff]  ;;  %v1822_v34 = vld [vmem:[%s2594_s22] sm:$0xff] }
 0x42c   : > { %v1163_v37 = vpack.c.bf16 %v1162_v35, %v1161_v36  ;;  %1352 = vmatpush.bf16.msra.mxu3 %v1824_v32  ;;  %v1981_v36 = vld [vmem:[%s766_s11] ss:$0 sm:$0xff]  ;;  %s2903_s11 = scalar_lea.vmem [#allocation8], %s2535_s30 }
 0x42e   : > { %1778 = vmatmul.msk.bf16.vlgmr.msra.gmra.mxu0 %vm815_vm1, %v1163_v37 }
 0x430   : > { %1353 = vmatpush.bf16.msra.mxu3 %v1823_v33 }
 0x434   : > { %1354 = vmatpush.bf16.msra.mxu3 %v1822_v34 }
 0x4ab   : > { %v1196_v16 = vpop.f32.mrf.mxu0 }
 0x4ac   : > { %v1197_v39 = vadd.f32 %v1978_v38, %v1196_v16 }
 0x4ae   : > { %v1201_v40 = vadd.f32 %v1197_v39, %v2610_v4  ;;  %v2691_v4 = vsel %vm1216_vm5, %v2018_v47, %v1215_v51 }
 0x4b0   : > { %v1205_v41 = vsel %vm815_vm1, %v1201_v40, 0.0 }
 0x4b1   : > { %1206 = vadd.xlane.f32.xlu2 %v1205_v41 }
 0x4b3   : > { %v1198_v42 = vpop.f32.mrf.mxu0 }
 0x4b4   : > { %v1199_v43 = vadd.f32 %v1978_v38, %v1198_v42  ;;  %v1982_v42 = vld [vmem:[%s774_s26] ss:$0 sm:$0xff] }
 0x4b6   : > { %v1202_v44 = vadd.f32 %v1199_v43, %v2613_v5 }
 0x4b8   : > { %v1208_v45 = vsel %vm815_vm1, %v1202_v44, 0.0 }
 0x4b9   : > { %1209 = vadd.xlane.f32.xlu1 %v1208_v45 }
 0x524   : > { %v1207_v52 = vpop.xlane.xlu2 %1206 }
 0x525   : > { %v1218_v53 = vmul.f32 %v2691_v4, %v1207_v52 }
 0x527   : > { %v1220_v54 = vsub.f32 %v1201_v40, %v1218_v53 }
 0x529   : > { %v1222_v5 = vmul.f32 %v1220_v54, %v1220_v54 }
 0x52b   : > { %v1224_v55 = vsel %vm815_vm1, %v1222_v5, 0.0 }
 0x52c   : > { %v1210_v56 = vpop.xlane.xlu1 %1209  ;;  %1225 = vadd.xlane.f32.xlu0 %v1224_v55 }
 0x52d   : > { %v1219_v57 = vmul.f32 %v2691_v4, %v1210_v56 }
 0x52f   : > { %v1221_v58 = vsub.f32 %v1202_v44, %v1219_v57 }
 0x531   : > { %v1223_v59 = vmul.f32 %v1221_v58, %v1221_v58 }
 0x533   : > { %v1227_v60 = vsel %vm815_vm1, %v1223_v59, 0.0 }
 0x534   : > { %1228 = vadd.xlane.f32.xlu1 %v1227_v60 }
 0x59f   : > { %v1226_v62 = vpop.xlane.xlu0 %1225 }
 0x5a0   : > { %v1230_v63 = vmul.f32 %v1226_v62, %v2691_v4 }
 0x5a2   : > { %v1232_v0 = vadd.f32 1e-05, %v1230_v63 }
 0x5a4   : > { %2019 = vrsqrt.f32 %v1232_v0  ;;  %vm1240_vm7 = vweird.f32 %v1232_v0 }
 0x5a7   : > { %v1229_v3 = vpop.xlane.xlu1 %1228 }
 0x5a8   : > { %v1231_v7 = vmul.f32 %v1229_v3, %v2691_v4 }
 0x5aa   : > { %v2020_v8 = vpop.eup %2019  ;;  %v1233_v9 = vadd.f32 1e-05, %v1231_v7 }
 0x5ab   : > { %v1235_v10 = vmul.f32 %v2020_v8, %v1232_v0  ;;  %vm1241_vm6 = vweird.f32 %v2020_v8 }
 0x5ac   : > { %2021 = vrsqrt.f32 %v1233_v9  ;;  %vm1242_vm8 = vmor %vm1240_vm7, %vm1241_vm6  ;;  %vm1250_vm10 = vweird.f32 %v1233_v9 }
 0x5ad   : > { %v1236_v11 = vmul.f32 %v2020_v8, %v1235_v10 }
 0x5af   : > { %v1237_v12 = vmul.f32 0.5, %v1236_v11 }
 0x5b1   : > { %v1238_v6 = vsub.f32 1.5, %v1237_v12 }
 0x5b2   : > { %v2022_v13 = vpop.eup %2021 }
 0x5b3   : > { %v1239_v14 = vmul.f32 %v2020_v8, %v1238_v6  ;;  %v1245_v15 = vmul.f32 %v2022_v13, %v1233_v9  ;;  %vm1251_vm9 = vweird.f32 %v2022_v13  ;;  %v1983_v6 = vld [vmem:[%s2903_s11] ss:$0 sm:$0xff] }
 0x5b4   : > { %vm1252_vm11 = vmor %vm1250_vm10, %vm1251_vm9 }
 0x5b5   : > { %v1246_v17 = vmul.f32 %v2022_v13, %v1245_v15  ;;  %v1243_v18 = vsel %vm1242_vm8, %v2020_v8, %v1239_v14  ;;  %v1984_v15 = vld [vmem:[%s780_s7] ss:$0 sm:$0xff] }
 0x5b6   : > { %v1254_v22 = vmul.f32 %v1243_v18, %v1220_v54 }
 0x5b7   : > { %v1247_v19 = vmul.f32 0.5, %v1246_v17 }
 0x5b8   : > { %v1259_v26 = vmul.f32 %v1979_v21, %v1254_v22 }
 0x5b9   : > { %v1248_v20 = vsub.f32 1.5, %v1247_v19 }
 0x5ba   : > { %v1264_v29 = vadd.f32 %v1980_v25, %v1259_v26 }
 0x5bb   : > { %v1249_v23 = vmul.f32 %v2022_v13, %v1248_v20 }
 0x5bd   : > { %v1253_v24 = vsel %vm1252_vm11, %v2022_v13, %v1249_v23 }
 0x5be   : > { %v1255_v27 = vmul.f32 %v1253_v24, %v1221_v58 }
 0x5c0   : > { %v1260_v28 = vmul.f32 %v1979_v21, %v1255_v27 }
 0x5c2   : > { %v1265_v30 = vadd.f32 %v1980_v25, %v1260_v28 }
 0x5c4   : > { %v1266_v31 = vpack.c.bf16 %v1265_v30, %v1264_v29 }
 0x5c6   : > { %1787 = vmatmul.msk.bf16.vlgmr.msra.gmra.mxu1 %vm815_vm1, %v1266_v31 }
 0x643   : > { %v1299_v35 = vpop.f32.mrf.mxu1 }
 0x644   : > { %v1300_v37 = vadd.f32 %v1981_v36, %v1299_v35 }
 0x646   : > { %v1304_v39 = vmax.f32 %v1300_v37, 0.0 }
 0x64b   : > { %v1301_v38 = vpop.f32.mrf.mxu1 }
 0x64c   : > { %v1302_v16 = vadd.f32 %v1981_v36, %v1301_v38 }
 0x64e   : > { %v1305_v40 = vmax.f32 %v1302_v16, 0.0 }
 0x650   : > { %v1306_v41 = vpack.c.bf16 %v1305_v40, %v1304_v39 }
 0x652   : > { %1804 = vmatmul.msk.bf16.vlgmr.msra.gmra.mxu3 %vm1343_vm12, %v1306_v41 }
 0x6d5   : > { %v1356_v43 = vpop.f32.mrf.mxu3 }
 0x6d6   : > { %v1357_v44 = vadd.f32 %v1982_v42, %v1356_v43 }
 0x6d8   : > { %v1361_v45 = vadd.f32 %v1357_v44, %v1264_v29 }
 0x6da   : > { %v1365_v46 = vsel %vm815_vm1, %v1361_v45, 0.0 }
 0x6db   : > { %1366 = vadd.xlane.f32.xlu1 %v1365_v46 }
 0x6dd   : > { %v1358_v47 = vpop.f32.mrf.mxu3 }
 0x6de   : > { %v1359_v48 = vadd.f32 %v1982_v42, %v1358_v47 }
 0x6e0   : > { %v1362_v49 = vadd.f32 %v1359_v48, %v1265_v30 }
 0x6e2   : > { %v1368_v50 = vsel %vm815_vm1, %v1362_v49, 0.0 }
 0x6e3   : > { %1369 = vadd.xlane.f32.xlu1 %v1368_v50 }
 0x74e   : > { %v1367_v51 = vpop.xlane.xlu1 %1366 }
 0x74f   : > { %v1371_v52 = vmul.f32 %v1367_v51, %v2691_v4 }
 0x751   : > { %v1373_v53 = vsub.f32 %v1361_v45, %v1371_v52 }
 0x753   : > { %v1375_v54 = vmul.f32 %v1373_v53, %v1373_v53 }
 0x755   : > { %v1377_v5 = vsel %vm815_vm1, %v1375_v54, 0.0 }
 0x756   : > { %1378 = vadd.xlane.f32.xlu1 %v1377_v5  ;;  %v1370_v55 = vpop.xlane.xlu1 %1369 }
 0x757   : > { %v1372_v56 = vmul.f32 %v1370_v55, %v2691_v4 }
 0x759   : > { %v1374_v57 = vsub.f32 %v1362_v49, %v1372_v56 }
 0x75b   : > { %v1376_v58 = vmul.f32 %v1374_v57, %v1374_v57 }
 0x75d   : > { %v1380_v59 = vsel %vm815_vm1, %v1376_v58, 0.0 }
 0x75e   : > { %1381 = vadd.xlane.f32.xlu2 %v1380_v59 }
 0x7c9   : > { %v1379_v60 = vpop.xlane.xlu1 %1378 }
 0x7ca   : > { %v1383_v61 = vmul.f32 %v1379_v60, %v2691_v4 }
 0x7cc   : > { %v1385_v62 = vadd.f32 1e-05, %v1383_v61 }
 0x7ce   : > { %2023 = vrsqrt.f32 %v1385_v62  ;;  %vm1393_vm14 = vweird.f32 %v1385_v62 }
 0x7d1   : > { %v1382_v63 = vpop.xlane.xlu2 %1381 }
 0x7d2   : > { %v1384_v0 = vmul.f32 %v1382_v63, %v2691_v4 }
 0x7d4   : > { %v2024_v1 = vpop.eup %2023  ;;  %v1386_v2 = vadd.f32 1e-05, %v1384_v0 }
 0x7d5   : > { %v1388_v3 = vmul.f32 %v2024_v1, %v1385_v62  ;;  %vm1394_vm13 = vweird.f32 %v2024_v1 }
 0x7d6   : > { %2025 = vrsqrt.f32 %v1386_v2  ;;  %vm1395_vm15 = vmor %vm1393_vm14, %vm1394_vm13  ;;  %vm1403_vm2 = vweird.f32 %v1386_v2 }
 0x7d7   : > { %v1389_v7 = vmul.f32 %v2024_v1, %v1388_v3 }
 0x7d9   : > { %v1390_v8 = vmul.f32 0.5, %v1389_v7 }
 0x7db   : > { %v1391_v9 = vsub.f32 1.5, %v1390_v8 }
 0x7dc   : > { %v2026_v10 = vpop.eup %2025 }
 0x7dd   : > { %v1392_v11 = vmul.f32 %v2024_v1, %v1391_v9  ;;  %v1398_v12 = vmul.f32 %v2026_v10, %v1386_v2  ;;  %vm1404_vm0 = vweird.f32 %v2026_v10 }
 0x7de   : > { %vm1405_vm3 = vmor %vm1403_vm2, %vm1404_vm0 }
 0x7df   : > { %v1396_v13 = vsel %vm1395_vm15, %v2024_v1, %v1392_v11  ;;  %v1399_v14 = vmul.f32 %v2026_v10, %v1398_v12 }
 0x7e0   : > { %v1407_v17 = vmul.f32 %v1396_v13, %v1373_v53 }
 0x7e1   : > { %v1400_v18 = vmul.f32 0.5, %v1399_v14 }
 0x7e2   : > { %v1412_v19 = vmul.f32 %v1983_v6, %v1407_v17 }
 0x7e3   : > { %v1401_v20 = vsub.f32 1.5, %v1400_v18 }
 0x7e4   : > { %v1417_v21 = vadd.f32 %v1984_v15, %v1412_v19 }
 0x7e5   : > { %v1402_v22 = vmul.f32 %v2026_v10, %v1401_v20 }
 0x7e7   : > { %v1406_v23 = vsel %vm1405_vm3, %v2026_v10, %v1402_v22 }
 0x7e8   : > { %v1408_v24 = vmul.f32 %v1406_v23, %v1374_v57  ;;  %1422 = sbr.rel (%p1805_p10) target bundleno = 2031 (0x7ef), region = 104 }
 0x7ea   : > { %v1413_v25 = vmul.f32 %v1983_v6, %v1408_v24 }
 0x7ec   : > { %v1418_v26 = vadd.f32 %v1984_v15, %v1413_v25 }
 0x7ed   : > { %1423 = vst.msk [vmem:[%s2604_s13] sm:$0xff] %vm815_vm1, %v1417_v21 }
 0x7ee   : > { %1424 = vst.msk [vmem:[%s2604_s13 + $0x8] sm:$0xff] %vm815_vm1, %v1418_v26 }
 0x7ef PF: > { %p1806_p11 = scmp.ne.s32.totalorder %s2267_s24, 1 }
 0x7f0   : > { %s2905_s7 = sld [smem:[#allocation41_spill]] (!%p1806_p11) }
 0x7f1   : > { %1428 = sbr.rel (%p1806_p11) target bundleno = 2315 (0x90b), region = 108  ;;  %s2906_s14 = sld [smem:[#allocation42_spill]] (!%p1806_p11) }
 0x7f6   : > { %v1431_v27 = vsel %vm815_vm1, %v1417_v21, 0.0  ;;  %v1434_v28 = vsel %vm815_vm1, %v1418_v26, 0.0  ;;  %v2027_v52 = vld [vmem:[%s2905_s7] ss:$0 sm:$0xff] }
 0x7f7   : > { %1432 = vadd.xlane.f32.xlu0 %v1431_v27  ;;  %v2028_v5 = vld [vmem:[%s2906_s14] ss:$0 sm:$0xff] }
 0x7ff   : > { %1435 = vadd.xlane.f32.xlu0 %v1434_v28 }
 0x86a   : > { %v1433_v29 = vpop.xlane.xlu0 %1432 }
 0x86b   : > { %v1437_v30 = vmul.f32 %v1433_v29, %v2691_v4 }
 0x86d   : > { %v1439_v31 = vsub.f32 %v1417_v21, %v1437_v30 }
 0x86f   : > { %v1441_v32 = vmul.f32 %v1439_v31, %v1439_v31 }
 0x871   : > { %v1443_v33 = vsel %vm815_vm1, %v1441_v32, 0.0 }
 0x872   : > { %1444 = vadd.xlane.f32.xlu1 %v1443_v33  ;;  %v1436_v34 = vpop.xlane.xlu0 %1435 }
 0x873   : > { %v1438_v35 = vmul.f32 %v1436_v34, %v2691_v4 }
 0x875   : > { %v1440_v36 = vsub.f32 %v1418_v26, %v1438_v35 }
 0x877   : > { %v1442_v37 = vmul.f32 %v1440_v36, %v1440_v36 }
 0x879   : > { %v1446_v38 = vsel %vm815_vm1, %v1442_v37, 0.0 }
 0x87a   : > { %1447 = vadd.xlane.f32.xlu1 %v1446_v38 }
 0x8e5   : > { %v1445_v16 = vpop.xlane.xlu1 %1444 }
 0x8e6   : > { %v1449_v39 = vmul.f32 %v1445_v16, %v2691_v4 }
 0x8e8   : > { %v1451_v40 = vadd.f32 1e-05, %v1449_v39 }
 0x8ea   : > { %2029 = vrsqrt.f32 %v1451_v40  ;;  %vm1459_vm5 = vweird.f32 %v1451_v40 }
 0x8ed   : > { %v1448_v41 = vpop.xlane.xlu1 %1447 }
 0x8ee   : > { %v1450_v42 = vmul.f32 %v1448_v41, %v2691_v4 }
 0x8f0   : > { %v2030_v43 = vpop.eup %2029  ;;  %v1452_v44 = vadd.f32 1e-05, %v1450_v42 }
 0x8f1   : > { %v1454_v45 = vmul.f32 %v2030_v43, %v1451_v40  ;;  %vm1460_vm4 = vweird.f32 %v2030_v43 }
 0x8f2   : > { %2031 = vrsqrt.f32 %v1452_v44  ;;  %vm1461_vm6 = vmor %vm1459_vm5, %vm1460_vm4  ;;  %vm1469_vm8 = vweird.f32 %v1452_v44 }
 0x8f3   : > { %v1455_v46 = vmul.f32 %v2030_v43, %v1454_v45 }
 0x8f5   : > { %v1456_v47 = vmul.f32 0.5, %v1455_v46 }
 0x8f7   : > { %v1457_v48 = vsub.f32 1.5, %v1456_v47 }
 0x8f8   : > { %v2032_v49 = vpop.eup %2031 }
 0x8f9   : > { %v1458_v50 = vmul.f32 %v2030_v43, %v1457_v48  ;;  %v1464_v51 = vmul.f32 %v2032_v49, %v1452_v44  ;;  %vm1470_vm7 = vweird.f32 %v2032_v49 }
 0x8fa   : > { %vm1471_vm9 = vmor %vm1469_vm8, %vm1470_vm7 }
 0x8fb   : > { %v1462_v53 = vsel %vm1461_vm6, %v2030_v43, %v1458_v50  ;;  %v1465_v4 = vmul.f32 %v2032_v49, %v1464_v51 }
 0x8fc   : > { %v1473_v54 = vmul.f32 %v1462_v53, %v1439_v31 }
 0x8fd   : > { %v1466_v55 = vmul.f32 0.5, %v1465_v4 }
 0x8fe   : > { %v1478_v56 = vmul.f32 %v2027_v52, %v1473_v54 }
 0x8ff   : > { %v1467_v57 = vsub.f32 1.5, %v1466_v55 }
 0x900   : > { %v1483_v58 = vadd.f32 %v2028_v5, %v1478_v56 }
 0x901   : > { %v1468_v59 = vmul.f32 %v2032_v49, %v1467_v57 }
 0x902   : > { %1485 = vst.msk [vmem:[%s2604_s13] sm:$0xff] %vm815_vm1, %v1483_v58 }
 0x903   : > { %v1472_v60 = vsel %vm1471_vm9, %v2032_v49, %v1468_v59 }
 0x904   : > { %v1474_v61 = vmul.f32 %v1472_v60, %v1440_v36 }
 0x906   : > { %v1479_v62 = vmul.f32 %v2027_v52, %v1474_v61 }
 0x908   : > { %v1484_v63 = vadd.f32 %v2028_v5, %v1479_v62 }
 0x90a   : > { %1486 = vst.msk [vmem:[%s2604_s13 + $0x8] sm:$0xff] %vm815_vm1, %v1484_v63 }
 0x90b PF: > { %s1826_s2 = sshll.u32 %s2271_s25, 4  ;;  %s2908_s29 = sld [smem:[#allocation43_spill]] }
 0x90c   : > { %s1500_s23 = sshll.u32 %s2604_s13, 4  ;;  %s2909_s0 = sand.u32 1, %s2247_s19   ;;  %s1501_s23 = int_to_ptr.vmem [resolvable:$true] %s1500_s23 }
 0x90d   : > { %s1488_s1 = scalar_lea.sflag [#allocation4], %s2909_s0 }
 0x911   : > { %s1499_s10 = scalar_lea.hbm %s2908_s29, %s1826_s2  ;;  %s2173_s25 = scalar_lea.hbm %s2908_s29, 32 }
 0x912   : > { %s1502_s15 = sshll.u32 %s1499_s10, 4  ;;  %s1503_s15 = int_to_ptr.hbm [resolvable:$true] %s1502_s15 }
 0x913   : > { %s2167_s9 = sshra.s32 %s1503_s15, 4  ;;  %s2168_s9 = int_to_ptr.hbm [resolvable:$true] %s2167_s9 }
 0x914   : > { %s2169_s12 = scalar_lea.hbm %s2168_s9, 16  ;;  %p2174_p4 = scmp.lt.s32.totalorder %s2168_s9, %s2908_s29 }
 0x915   : > { %p2170_p13 = scmp.ne.s32.totalorder %s2168_s9, %s2169_s12  ;;  %p2175_p3 = scmp.lt.s32.totalorder %s2173_s25, %s2169_s12 }
 0x917   : > { %p2171_p0 = pnand %p2170_p13, %p2475_p12  ;;  %p2176_p5 = por %p2175_p3, %p2174_p4 }
 0x919   : > { %p2172_p1 = pneg %p2171_p0 }
 0x91b   : > { %p2177_p6 = pnand %p2176_p5, %p2172_p1 }
 0x91d   : > { %2180 = shalt.err (!%p2177_p6)
}
 0x91e   : > { %s2302_s13 = smov 128  }
 0x91f   : > { %1835 = dma.vmem_to_hbm [thread:$0]  (%p2475_p12), %s1501_s23, 256, %s1503_s15, %s1488_s1, %s2302_s13, %s2302_s13, %s2298_s17  }
 0x920 PF: > { %s2910_s21 = sld [smem:[#allocation21_spill]] }
 0x921   : > { %s2911_s11 = sld [smem:[#allocation15_spill]] }
 0x926   : > { %p1855_p7 = scmp.ge.s32.totalorder %s2910_s21, 2 }
 0x927   : > { %s1517_s26 = sand.u32 1, %s2911_s11  }
 0x928   : > { %p1851_p9 = pnand %p1855_p7, %p2485_p2  ;;  %s1518_s16 = scalar_lea.sflag [#allocation4], %s1517_s26 }
 0x92a   : > { %p1852_p8 = pneg %p1851_p9 }
 0x92c   : > { %2238 = dma.done.wait (%p1852_p8), %s1518_s16, 256  }
 0x92d   : > { %2240 = vsyncadd (%p1852_p8), %s1518_s16, 4294967040  ;;  %s37_s28 = sadd.s32 1, %s2910_s21   ;;  %s2913_s24 = sld [smem:[#allocation16_spill]] }
 0x92e   : > { %p34_p10 = scmp.ge.s32.totalorder %s37_s28, 6   ;;  %s2914_s20 = sld [smem:[#allocation25_spill]] }
 0x92f   : > { %s2915_s21 = sld [smem:[#allocation17_spill]]  ;;  %s2922_s18 = smov %s2247_s19 }
 0x930   : > { %s2916_s22 = sld [smem:[#allocation18_spill]] }
 0x931   : > { %s2917_s23 = sld [smem:[#allocation24_spill]] }
 0x932   : > { %s2918_s17 = sld [smem:[#allocation19_spill]] }
 0x933   : > { %s2919_s25 = sld [smem:[#allocation20_spill]]  ;;  %s2923_s19 = smov %s2913_s24 }
 0x934   : > { %s2920_s26 = sld [smem:[#allocation22_spill]]  ;;  %36 = sbr.rel (!%p34_p10) target bundleno = 30 (0x1e), region = 201 }
 0x935   : > { %s2921_s27 = sld [smem:[#allocation23_spill]] }
 0x938   : > { %s2924_s24 = smov %s2918_s17 }
 0x939   :  { %1524 = vsyncpa [#allocation3], 1 }
 0x93a   :  { %1526 = vsyncpa [#allocation3 + $0x1], 1 }
 0x93b   :  { %1527 = vsyncpa [#allocation6], 1 }
 0x93c   :  { %1529 = vsyncpa [#allocation6 + $0x1], 1 }
 0x93d   :  { %1530 = vsyncpa [#allocation9], 1 }
 0x93e   :  { %1532 = vsyncpa [#allocation9 + $0x1], 1 }
 0x93f   :  { %1533 = vsyncpa [#allocation4], 1 }
 0x940   :  { %1535 = vsyncpa [#allocation4 + $0x1], 1 }

</bundles_post_ra>
